<compile_context>
chip_gen: v7x
topology: tpu7x:2x2x1
jax: 0.10.0
libtpu: 0.0.40
codegen_flags: <defaults>
</compile_context>

<pallas_src>
import jax
import jax.numpy as jnp
from jax import lax
from jax.experimental import pallas as pl
from jax.experimental.pallas import tpu as pltpu

EPS = 1e-5


# -----------------------------------------------------------------------------
# Kernel A: conv1 (1x1x1) + BN1 + ReLU, written directly into a zero-padded
# (N, D+2, H+2, W+2, planes) bf16 buffer (halo slabs/rings are zero), so the
# 3x3x3 stage needs no jnp.pad and no halo DMA logic.
# Grid: (N, D+2); each step is an (H*W, Cin) x (Cin, planes) MXU matmul.
# -----------------------------------------------------------------------------
def _conv1_bn_relu_kernel(x_ref, w_ref, s_ref, b_ref, o_ref):
    d = pl.program_id(1)
    nd = pl.num_programs(1)
    _, _, H, W, Cin = x_ref.shape
    P = o_ref.shape[-1]

    # Zero the whole padded block; the interior is overwritten below, the
    # D/H/W halo stays exactly zero.
    o_ref[...] = jnp.zeros_like(o_ref)

    @pl.when((d > 0) & (d < nd - 1))
    def _():
        x2d = x_ref[...].reshape(H * W, Cin).astype(jnp.bfloat16)
        y = jnp.dot(x2d, w_ref[...], preferred_element_type=jnp.float32)
        y = jnp.maximum(y * s_ref[...] + b_ref[...], 0.0)
        o_ref[0, 0, 1:H + 1, 1:W + 1, :] = y.reshape(H, W, P).astype(o_ref.dtype)


def conv1_bn_relu_padded(x, w1, scale, bias):
    N, D, H, W, Cin = x.shape
    P = w1.shape[1]
    s = scale.reshape(1, P).astype(jnp.float32)
    b = bias.reshape(1, P).astype(jnp.float32)

    def x_map(n, d):
        # halo slabs (d==0, d==D+1) reuse a clamped (unused) input block
        return (n, jnp.clip(d - 1, 0, D - 1), 0, 0, 0)

    return pl.pallas_call(
        _conv1_bn_relu_kernel,
        out_shape=jax.ShapeDtypeStruct((N, D + 2, H + 2, W + 2, P), jnp.bfloat16),
        grid=(N, D + 2),
        in_specs=[
            pl.BlockSpec((1, 1, H, W, Cin), x_map),
            pl.BlockSpec((Cin, P), lambda n, d: (0, 0)),
            pl.BlockSpec((1, P), lambda n, d: (0, 0)),
            pl.BlockSpec((1, P), lambda n, d: (0, 0)),
        ],
        out_specs=pl.BlockSpec((1, 1, H + 2, W + 2, P),
                               lambda n, d: (n, d, 0, 0, 0)),
        compiler_params=pltpu.CompilerParams(
            dimension_semantics=("parallel", "parallel")),
    )(x, w1.astype(jnp.bfloat16), s, b)


# -----------------------------------------------------------------------------
# Kernel B: fused conv2 (3x3x3, pad=1) + BN2 + ReLU + conv3 (1x1x1) + BN3 +
# residual add + ReLU.
# Grid: (N, D, H//TH). The padded conv1 output stays resident in VMEM per
# batch element (re-fetched only when n changes); each step slices a
# (3, TH+2, W+2, P) window with pl.ds, builds a 9-tap im2col patch per depth
# tap (K = 9*P) and issues 3 fat MXU matmuls, then a (TH*W, P)x(P, 4P) matmul
# for conv3 with the BN/residual/ReLU epilogue on the VPU.
# -----------------------------------------------------------------------------
def _conv2_conv3_residual_kernel(x1_ref, w2_ref, s2_ref, b2_ref,
                                 w3_ref, s3_ref, b3_ref, res_ref, o_ref):
    d = pl.program_id(1)
    _, _, TH, W, C4 = o_ref.shape
    P = x1_ref.shape[-1]
    h0 = pl.multiple_of(pl.program_id(2) * TH, TH)

    # (3, TH+2, W+2, P) bf16 window of the padded conv1 output.
    xwin = x1_ref[0, pl.ds(d, 3), pl.ds(h0, TH + 2)]

    acc = jnp.zeros((TH * W, P), jnp.float32)
    for kd in range(3):                       # 3 matmuls, K = 9*P each
        slab = xwin[kd]                       # (TH+2, W+2, P)
        parts = [slab[kh:kh + TH, kw:kw + W, :]
                 for kh in range(3) for kw in range(3)]
        patch = jnp.concatenate(parts, axis=-1)          # (TH, W, 9*P)
        acc = acc + jnp.dot(patch.reshape(TH * W, 9 * P), w2_ref[kd],
                            preferred_element_type=jnp.float32)

    # BN2 + ReLU epilogue (f32), then conv3 on the MXU in bf16.
    y2 = jnp.maximum(acc * s2_ref[...] + b2_ref[...], 0.0)
    y3 = jnp.dot(y2.astype(jnp.bfloat16), w3_ref[...],
                 preferred_element_type=jnp.float32)
    # BN3 + residual (kept f32 for the skip path) + ReLU.
    y3 = y3 * s3_ref[...] + b3_ref[...] + res_ref[...].reshape(TH * W, C4)
    o_ref[...] = jnp.maximum(y3, 0.0).reshape(1, 1, TH, W, C4).astype(o_ref.dtype)


def _pick_h_tile(H, target=16):
    if H <= target:
        return H
    for t in range(target, 0, -1):
        if H % t == 0:
            return t
    return H


def conv2_conv3_residual(out1p, x_res, w2f, s2, b2, w3, s3, b3, h_tile=None):
    N, Dp2, Hp2, Wp2, P = out1p.shape
    D, H, W = Dp2 - 2, Hp2 - 2, Wp2 - 2
    C4 = w3.shape[1]
    TH = _pick_h_tile(H) if h_tile is None else h_tile
    assert H % TH == 0
    nh = H // TH

    s2r = s2.reshape(1, P).astype(jnp.float32)
    b2r = b2.reshape(1, P).astype(jnp.float32)
    s3r = s3.reshape(1, C4).astype(jnp.float32)
    b3r = b3.reshape(1, C4).astype(jnp.float32)

    return pl.pallas_call(
        _conv2_conv3_residual_kernel,
        out_shape=jax.ShapeDtypeStruct((N, D, H, W, C4), x_res.dtype),
        grid=(N, D, nh),
        in_specs=[
            # padded conv1 output: resident per batch element across (d, h)
            pl.BlockSpec((1, Dp2, Hp2, Wp2, P), lambda n, d, h: (n, 0, 0, 0, 0)),
            pl.BlockSpec((3, 9 * P, P), lambda n, d, h: (0, 0, 0)),
            pl.BlockSpec((1, P), lambda n, d, h: (0, 0)),
            pl.BlockSpec((1, P), lambda n, d, h: (0, 0)),
            pl.BlockSpec((P, C4), lambda n, d, h: (0, 0)),
            pl.BlockSpec((1, C4), lambda n, d, h: (0, 0)),
            pl.BlockSpec((1, C4), lambda n, d, h: (0, 0)),
            pl.BlockSpec((1, 1, TH, W, C4), lambda n, d, h: (n, d, h, 0, 0)),
        ],
        out_specs=pl.BlockSpec((1, 1, TH, W, C4), lambda n, d, h: (n, d, h, 0, 0)),
        compiler_params=pltpu.CompilerParams(
            dimension_semantics=("parallel", "parallel", "parallel"),
            vmem_limit_bytes=48 * 1024 * 1024,
        ),
    )(out1p, w2f, s2r, b2r, w3, s3r, b3r, x_res)


# -----------------------------------------------------------------------------
# Bottleneck forward (wrapper / glue).
# -----------------------------------------------------------------------------
def _fold_bn(bn):
    scale = bn["gamma"] * lax.rsqrt(bn["var"] + EPS)
    bias = bn["beta"] - bn["mean"] * scale
    return scale, bias


@jax.jit
def bottleneck_forward(x_ncdhw, params):
    # NCDHW -> NDHWC (channels on the 128-lane axis).
    x = jnp.transpose(x_ncdhw, (0, 2, 3, 4, 1))
    planes = params["w1"].shape[1]

    s1, b1 = _fold_bn(params["bn1"])
    s2, b2 = _fold_bn(params["bn2"])
    s3, b3 = _fold_bn(params["bn3"])

    # Stage 1: conv1 + bn1 + relu -> bf16, zero-padded by 1 in D/H/W.
    out1p = conv1_bn_relu_padded(x, params["w1"], s1, b1)

    # Stage 2: conv2 + bn2 + relu + conv3 + bn3 + residual + relu (fused).
    # weight (3,3,3,P,P) -> (3, 9P, P), row order (kh, kw, cin) matching the
    # in-kernel im2col concat order.
    w2f = params["w2"].reshape(3, 9 * planes, planes).astype(jnp.bfloat16)
    w3b = params["w3"].astype(jnp.bfloat16)
    out = conv2_conv3_residual(out1p, x, w2f, s2, b2, w3b, s3, b3)

    # NDHWC -> NCDHW
    return jnp.transpose(out, (0, 4, 1, 2, 3))


# -----------------------------------------------------------------------------
# Pure-JAX f32 reference (sanity check).
# -----------------------------------------------------------------------------
@jax.jit
def bottleneck_reference(x_ncdhw, params):
    x = jnp.transpose(x_ncdhw, (0, 2, 3, 4, 1))
    dn = ("NDHWC", "DHWIO", "NDHWC")

    def bn(y, p):
        return (y - p["mean"]) * lax.rsqrt(p["var"] + EPS) * p["gamma"] + p["beta"]

    w1 = params["w1"].reshape(1, 1, 1, *params["w1"].shape)
    w3 = params["w3"].reshape(1, 1, 1, *params["w3"].shape)

    out = lax.conv_general_dilated(x, w1, (1, 1, 1), "VALID", dimension_numbers=dn)
    out = jnp.maximum(bn(out, params["bn1"]), 0.0)
    out = lax.conv_general_dilated(out, params["w2"], (1, 1, 1), "SAME",
                                   dimension_numbers=dn)
    out = jnp.maximum(bn(out, params["bn2"]), 0.0)
    out = lax.conv_general_dilated(out, w3, (1, 1, 1), "VALID", dimension_numbers=dn)
    out = bn(out, params["bn3"]) + x
    out = jnp.maximum(out, 0.0)
    return jnp.transpose(out, (0, 4, 1, 2, 3))


# -----------------------------------------------------------------------------
# Deterministic parameter construction (synthetic, no checkpoint).
# -----------------------------------------------------------------------------
def make_params(key, inplanes, planes):
    ks = jax.random.split(key, 6)

    def bn_params(k, c):
        k1, k2, k3, k4 = jax.random.split(k, 4)
        return {
            "gamma": 1.0 + 0.1 * jax.random.normal(k1, (c,), jnp.float32),
            "beta": 0.1 * jax.random.normal(k2, (c,), jnp.float32),
            "mean": 0.1 * jax.random.normal(k3, (c,), jnp.float32),
            "var": 0.5 + jnp.abs(jax.random.normal(k4, (c,), jnp.float32)) * 0.1,
        }

    return {
        # conv weights stored as (Cin, Cout) for 1x1x1 and (3,3,3,Cin,Cout) for 3x3x3
        "w1": 0.1 * jax.random.normal(ks[0], (inplanes, planes), jnp.float32),
        "w2": 0.1 * jax.random.normal(ks[1], (3, 3, 3, planes, planes), jnp.float32),
        "w3": 0.1 * jax.random.normal(ks[2], (planes, planes * 4), jnp.float32),
        "bn1": bn_params(ks[3], planes),
        "bn2": bn_params(ks[4], planes),
        "bn3": bn_params(ks[5], planes * 4),
    }


if __name__ == "__main__":
    # Small shapes consistent with the module; the identity residual requires
    # inplanes == planes * expansion (expansion = 4).
    N, planes = 2, 32
    inplanes = planes * 4          # 128
    D, H, W = 4, 8, 8

    key = jax.random.PRNGKey(0)
    kx, kp = jax.random.split(key)
    x = jax.random.normal(kx, (N, inplanes, D, H, W), jnp.float32)  # NCDHW input
    params = make_params(kp, inplanes, planes)

    out = jax.block_until_ready(bottleneck_forward(x, params))
    ref = jax.block_until_ready(bottleneck_reference(x, params))

    assert out.shape == (N, planes * 4, D, H, W), out.shape
    assert bool(jnp.isfinite(out).all())
    max_err = float(jnp.max(jnp.abs(out - ref)))
    ref_scale = float(jnp.max(jnp.abs(ref)))
    # bf16 MXU operands -> tolerance scaled to output magnitude.
    assert max_err <= 4e-2 * max(1.0, ref_scale), (max_err, ref_scale)

    print("KERNEL_OK")
</pallas_src>

<mosaic_0001>
module attributes {stable_mosaic.version = 11 : i64} {
  func.func @_conv2_conv3_residual_kernel(%arg0: i32, %arg1: i32, %arg2: i32, %arg3: memref<1x6x10x10x32xbf16, #tpu.memory_space<vmem>>, %arg4: memref<3x288x32xbf16, #tpu.memory_space<vmem>>, %arg5: memref<1x32xf32, #tpu.memory_space<vmem>>, %arg6: memref<1x32xf32, #tpu.memory_space<vmem>>, %arg7: memref<32x128xbf16, #tpu.memory_space<vmem>>, %arg8: memref<1x128xf32, #tpu.memory_space<vmem>>, %arg9: memref<1x128xf32, #tpu.memory_space<vmem>>, %arg10: memref<1x1x8x8x128xf32, #tpu.memory_space<vmem>>, %arg11: memref<1x1x8x8x128xf32, #tpu.memory_space<vmem>>) attributes {dimension_semantics = [#tpu.dimension_semantics<parallel>, #tpu.dimension_semantics<parallel>, #tpu.dimension_semantics<parallel>], iteration_bounds = array<i64: 2, 4, 1>, scalar_prefetch = 0 : i64, scratch_operands = 0 : i64, tpu.core_type = #tpu.core_type<tc>, window_params = [{transform_indices = @transform_0, window_bounds = array<i64: 1, 6, 10, 10, 32>}, {pipeline_mode = #tpu.pipeline_mode<synchronous>, transform_indices = @transform_1, window_bounds = array<i64: 3, 288, 32>}, {pipeline_mode = #tpu.pipeline_mode<synchronous>, transform_indices = @transform_2, window_bounds = array<i64: 1, 32>}, {pipeline_mode = #tpu.pipeline_mode<synchronous>, transform_indices = @transform_3, window_bounds = array<i64: 1, 32>}, {pipeline_mode = #tpu.pipeline_mode<synchronous>, transform_indices = @transform_4, window_bounds = array<i64: 32, 128>}, {pipeline_mode = #tpu.pipeline_mode<synchronous>, transform_indices = @transform_5, window_bounds = array<i64: 1, 128>}, {pipeline_mode = #tpu.pipeline_mode<synchronous>, transform_indices = @transform_6, window_bounds = array<i64: 1, 128>}, {transform_indices = @transform_7, window_bounds = array<i64: 1, 1, 8, 8, 128>}, {transform_indices = @transform_8, window_bounds = array<i64: 1, 1, 8, 8, 128>}]} {
    %c8_i32 = arith.constant 8 : i32
    %0 = arith.muli %arg2, %c8_i32 : i32
    %1 = tpu.assume_multiple %0, 8 : i32
    %c0 = arith.constant 0 : index
    %2 = arith.index_cast %arg1 : i32 to index
    %3 = arith.index_cast %1 : i32 to index
    %c0_0 = arith.constant 0 : index
    %c0_1 = arith.constant 0 : index
    %4 = vector.load %arg3[%c0, %2, %3, %c0_0, %c0_1] : memref<1x6x10x10x32xbf16, #tpu.memory_space<vmem>>, vector<1x3x10x10x32xbf16>
    %5 = vector.shape_cast %4 : vector<1x3x10x10x32xbf16> to vector<3x10x10x32xbf16>
    %cst = arith.constant 0.000000e+00 : f32
    %6 = vector.broadcast %cst : f32 to vector<64x32xf32>
    %7 = vector.extract_strided_slice %5 {offsets = [0, 0, 0, 0], sizes = [1, 10, 10, 32], strides = [1, 1, 1, 1]} : vector<3x10x10x32xbf16> to vector<1x10x10x32xbf16>
    %8 = vector.shape_cast %7 : vector<1x10x10x32xbf16> to vector<10x10x32xbf16>
    %9 = vector.extract_strided_slice %8 {offsets = [0, 0, 0], sizes = [8, 8, 32], strides = [1, 1, 1]} : vector<10x10x32xbf16> to vector<8x8x32xbf16>
    %10 = vector.extract_strided_slice %8 {offsets = [0, 1, 0], sizes = [8, 8, 32], strides = [1, 1, 1]} : vector<10x10x32xbf16> to vector<8x8x32xbf16>
    %11 = vector.extract_strided_slice %8 {offsets = [0, 2, 0], sizes = [8, 8, 32], strides = [1, 1, 1]} : vector<10x10x32xbf16> to vector<8x8x32xbf16>
    %12 = vector.extract_strided_slice %8 {offsets = [1, 0, 0], sizes = [8, 8, 32], strides = [1, 1, 1]} : vector<10x10x32xbf16> to vector<8x8x32xbf16>
    %13 = vector.extract_strided_slice %8 {offsets = [1, 1, 0], sizes = [8, 8, 32], strides = [1, 1, 1]} : vector<10x10x32xbf16> to vector<8x8x32xbf16>
    %14 = vector.extract_strided_slice %8 {offsets = [1, 2, 0], sizes = [8, 8, 32], strides = [1, 1, 1]} : vector<10x10x32xbf16> to vector<8x8x32xbf16>
    %15 = vector.extract_strided_slice %8 {offsets = [2, 0, 0], sizes = [8, 8, 32], strides = [1, 1, 1]} : vector<10x10x32xbf16> to vector<8x8x32xbf16>
    %16 = vector.extract_strided_slice %8 {offsets = [2, 1, 0], sizes = [8, 8, 32], strides = [1, 1, 1]} : vector<10x10x32xbf16> to vector<8x8x32xbf16>
    %17 = vector.extract_strided_slice %8 {offsets = [2, 2, 0], sizes = [8, 8, 32], strides = [1, 1, 1]} : vector<10x10x32xbf16> to vector<8x8x32xbf16>
    %18 = tpu.concatenate %9, %10, %11, %12, %13, %14, %15, %16, %17 in 2 : vector<8x8x32xbf16>, vector<8x8x32xbf16>, vector<8x8x32xbf16>, vector<8x8x32xbf16>, vector<8x8x32xbf16>, vector<8x8x32xbf16>, vector<8x8x32xbf16>, vector<8x8x32xbf16>, vector<8x8x32xbf16> -> vector<8x8x288xbf16>
    %19 = vector.shape_cast %18 : vector<8x8x288xbf16> to vector<64x288xbf16>
    %c0_2 = arith.constant 0 : index
    %c0_3 = arith.constant 0 : index
    %c0_4 = arith.constant 0 : index
    %20 = vector.load %arg4[%c0_2, %c0_3, %c0_4] : memref<3x288x32xbf16, #tpu.memory_space<vmem>>, vector<1x288x32xbf16>
    %21 = vector.shape_cast %20 : vector<1x288x32xbf16> to vector<288x32xbf16>
    %cst_5 = arith.constant dense<0.000000e+00> : vector<64x32xf32>
    %22 = tpu.matmul %19, %21, %cst_5 {dimension_numbers = #tpu.dot_dimension_numbers<[1], [0], [0], [1], [0, 0, 1, 1], [], []>} : vector<64x288xbf16>, vector<288x32xbf16>, vector<64x32xf32> -> vector<64x32xf32>
    %23 = arith.addf %6, %22 : vector<64x32xf32>
    %24 = vector.extract_strided_slice %5 {offsets = [1, 0, 0, 0], sizes = [1, 10, 10, 32], strides = [1, 1, 1, 1]} : vector<3x10x10x32xbf16> to vector<1x10x10x32xbf16>
    %25 = vector.shape_cast %24 : vector<1x10x10x32xbf16> to vector<10x10x32xbf16>
    %26 = vector.extract_strided_slice %25 {offsets = [0, 0, 0], sizes = [8, 8, 32], strides = [1, 1, 1]} : vector<10x10x32xbf16> to vector<8x8x32xbf16>
    %27 = vector.extract_strided_slice %25 {offsets = [0, 1, 0], sizes = [8, 8, 32], strides = [1, 1, 1]} : vector<10x10x32xbf16> to vector<8x8x32xbf16>
    %28 = vector.extract_strided_slice %25 {offsets = [0, 2, 0], sizes = [8, 8, 32], strides = [1, 1, 1]} : vector<10x10x32xbf16> to vector<8x8x32xbf16>
    %29 = vector.extract_strided_slice %25 {offsets = [1, 0, 0], sizes = [8, 8, 32], strides = [1, 1, 1]} : vector<10x10x32xbf16> to vector<8x8x32xbf16>
    %30 = vector.extract_strided_slice %25 {offsets = [1, 1, 0], sizes = [8, 8, 32], strides = [1, 1, 1]} : vector<10x10x32xbf16> to vector<8x8x32xbf16>
    %31 = vector.extract_strided_slice %25 {offsets = [1, 2, 0], sizes = [8, 8, 32], strides = [1, 1, 1]} : vector<10x10x32xbf16> to vector<8x8x32xbf16>
    %32 = vector.extract_strided_slice %25 {offsets = [2, 0, 0], sizes = [8, 8, 32], strides = [1, 1, 1]} : vector<10x10x32xbf16> to vector<8x8x32xbf16>
    %33 = vector.extract_strided_slice %25 {offsets = [2, 1, 0], sizes = [8, 8, 32], strides = [1, 1, 1]} : vector<10x10x32xbf16> to vector<8x8x32xbf16>
    %34 = vector.extract_strided_slice %25 {offsets = [2, 2, 0], sizes = [8, 8, 32], strides = [1, 1, 1]} : vector<10x10x32xbf16> to vector<8x8x32xbf16>
    %35 = tpu.concatenate %26, %27, %28, %29, %30, %31, %32, %33, %34 in 2 : vector<8x8x32xbf16>, vector<8x8x32xbf16>, vector<8x8x32xbf16>, vector<8x8x32xbf16>, vector<8x8x32xbf16>, vector<8x8x32xbf16>, vector<8x8x32xbf16>, vector<8x8x32xbf16>, vector<8x8x32xbf16> -> vector<8x8x288xbf16>
    %36 = vector.shape_cast %35 : vector<8x8x288xbf16> to vector<64x288xbf16>
    %c1 = arith.constant 1 : index
    %c0_6 = arith.constant 0 : index
    %c0_7 = arith.constant 0 : index
    %37 = vector.load %arg4[%c1, %c0_6, %c0_7] : memref<3x288x32xbf16, #tpu.memory_space<vmem>>, vector<1x288x32xbf16>
    %38 = vector.shape_cast %37 : vector<1x288x32xbf16> to vector<288x32xbf16>
    %cst_8 = arith.constant dense<0.000000e+00> : vector<64x32xf32>
    %39 = tpu.matmul %36, %38, %cst_8 {dimension_numbers = #tpu.dot_dimension_numbers<[1], [0], [0], [1], [0, 0, 1, 1], [], []>} : vector<64x288xbf16>, vector<288x32xbf16>, vector<64x32xf32> -> vector<64x32xf32>
    %40 = arith.addf %23, %39 : vector<64x32xf32>
    %41 = vector.extract_strided_slice %5 {offsets = [2, 0, 0, 0], sizes = [1, 10, 10, 32], strides = [1, 1, 1, 1]} : vector<3x10x10x32xbf16> to vector<1x10x10x32xbf16>
    %42 = vector.shape_cast %41 : vector<1x10x10x32xbf16> to vector<10x10x32xbf16>
    %43 = vector.extract_strided_slice %42 {offsets = [0, 0, 0], sizes = [8, 8, 32], strides = [1, 1, 1]} : vector<10x10x32xbf16> to vector<8x8x32xbf16>
    %44 = vector.extract_strided_slice %42 {offsets = [0, 1, 0], sizes = [8, 8, 32], strides = [1, 1, 1]} : vector<10x10x32xbf16> to vector<8x8x32xbf16>
    %45 = vector.extract_strided_slice %42 {offsets = [0, 2, 0], sizes = [8, 8, 32], strides = [1, 1, 1]} : vector<10x10x32xbf16> to vector<8x8x32xbf16>
    %46 = vector.extract_strided_slice %42 {offsets = [1, 0, 0], sizes = [8, 8, 32], strides = [1, 1, 1]} : vector<10x10x32xbf16> to vector<8x8x32xbf16>
    %47 = vector.extract_strided_slice %42 {offsets = [1, 1, 0], sizes = [8, 8, 32], strides = [1, 1, 1]} : vector<10x10x32xbf16> to vector<8x8x32xbf16>
    %48 = vector.extract_strided_slice %42 {offsets = [1, 2, 0], sizes = [8, 8, 32], strides = [1, 1, 1]} : vector<10x10x32xbf16> to vector<8x8x32xbf16>
    %49 = vector.extract_strided_slice %42 {offsets = [2, 0, 0], sizes = [8, 8, 32], strides = [1, 1, 1]} : vector<10x10x32xbf16> to vector<8x8x32xbf16>
    %50 = vector.extract_strided_slice %42 {offsets = [2, 1, 0], sizes = [8, 8, 32], strides = [1, 1, 1]} : vector<10x10x32xbf16> to vector<8x8x32xbf16>
    %51 = vector.extract_strided_slice %42 {offsets = [2, 2, 0], sizes = [8, 8, 32], strides = [1, 1, 1]} : vector<10x10x32xbf16> to vector<8x8x32xbf16>
    %52 = tpu.concatenate %43, %44, %45, %46, %47, %48, %49, %50, %51 in 2 : vector<8x8x32xbf16>, vector<8x8x32xbf16>, vector<8x8x32xbf16>, vector<8x8x32xbf16>, vector<8x8x32xbf16>, vector<8x8x32xbf16>, vector<8x8x32xbf16>, vector<8x8x32xbf16>, vector<8x8x32xbf16> -> vector<8x8x288xbf16>
    %53 = vector.shape_cast %52 : vector<8x8x288xbf16> to vector<64x288xbf16>
    %c2 = arith.constant 2 : index
    %c0_9 = arith.constant 0 : index
    %c0_10 = arith.constant 0 : index
    %54 = vector.load %arg4[%c2, %c0_9, %c0_10] : memref<3x288x32xbf16, #tpu.memory_space<vmem>>, vector<1x288x32xbf16>
    %55 = vector.shape_cast %54 : vector<1x288x32xbf16> to vector<288x32xbf16>
    %cst_11 = arith.constant dense<0.000000e+00> : vector<64x32xf32>
    %56 = tpu.matmul %53, %55, %cst_11 {dimension_numbers = #tpu.dot_dimension_numbers<[1], [0], [0], [1], [0, 0, 1, 1], [], []>} : vector<64x288xbf16>, vector<288x32xbf16>, vector<64x32xf32> -> vector<64x32xf32>
    %57 = arith.addf %40, %56 : vector<64x32xf32>
    %c0_12 = arith.constant 0 : index
    %c0_13 = arith.constant 0 : index
    %58 = vector.load %arg5[%c0_12, %c0_13] : memref<1x32xf32, #tpu.memory_space<vmem>>, vector<1x32xf32>
    %59 = vector.broadcast %58 : vector<1x32xf32> to vector<64x32xf32>
    %60 = arith.mulf %57, %59 : vector<64x32xf32>
    %c0_14 = arith.constant 0 : index
    %c0_15 = arith.constant 0 : index
    %61 = vector.load %arg6[%c0_14, %c0_15] : memref<1x32xf32, #tpu.memory_space<vmem>>, vector<1x32xf32>
    %62 = vector.broadcast %61 : vector<1x32xf32> to vector<64x32xf32>
    %63 = arith.addf %60, %62 : vector<64x32xf32>
    %cst_16 = arith.constant 0.000000e+00 : f32
    %64 = vector.broadcast %cst_16 : f32 to vector<64x32xf32>
    %65 = arith.maximumf %63, %64 : vector<64x32xf32>
    %66 = arith.truncf %65 : vector<64x32xf32> to vector<64x32xbf16>
    %c0_17 = arith.constant 0 : index
    %c0_18 = arith.constant 0 : index
    %67 = vector.load %arg7[%c0_17, %c0_18] : memref<32x128xbf16, #tpu.memory_space<vmem>>, vector<32x128xbf16>
    %cst_19 = arith.constant dense<0.000000e+00> : vector<64x128xf32>
    %68 = tpu.matmul %66, %67, %cst_19 {dimension_numbers = #tpu.dot_dimension_numbers<[1], [0], [0], [1], [0, 0, 1, 1], [], []>} : vector<64x32xbf16>, vector<32x128xbf16>, vector<64x128xf32> -> vector<64x128xf32>
    %c0_20 = arith.constant 0 : index
    %c0_21 = arith.constant 0 : index
    %69 = vector.load %arg8[%c0_20, %c0_21] : memref<1x128xf32, #tpu.memory_space<vmem>>, vector<1x128xf32>
    %70 = vector.broadcast %69 : vector<1x128xf32> to vector<64x128xf32>
    %71 = arith.mulf %68, %70 : vector<64x128xf32>
    %c0_22 = arith.constant 0 : index
    %c0_23 = arith.constant 0 : index
    %72 = vector.load %arg9[%c0_22, %c0_23] : memref<1x128xf32, #tpu.memory_space<vmem>>, vector<1x128xf32>
    %73 = vector.broadcast %72 : vector<1x128xf32> to vector<64x128xf32>
    %74 = arith.addf %71, %73 : vector<64x128xf32>
    %c0_24 = arith.constant 0 : index
    %c0_25 = arith.constant 0 : index
    %c0_26 = arith.constant 0 : index
    %c0_27 = arith.constant 0 : index
    %c0_28 = arith.constant 0 : index
    %75 = vector.load %arg10[%c0_24, %c0_25, %c0_26, %c0_27, %c0_28] : memref<1x1x8x8x128xf32, #tpu.memory_space<vmem>>, vector<1x1x8x8x128xf32>
    %76 = vector.shape_cast %75 : vector<1x1x8x8x128xf32> to vector<64x128xf32>
    %77 = arith.addf %74, %76 : vector<64x128xf32>
    %cst_29 = arith.constant 0.000000e+00 : f32
    %78 = vector.broadcast %cst_29 : f32 to vector<64x128xf32>
    %79 = arith.maximumf %77, %78 : vector<64x128xf32>
    %80 = vector.shape_cast %79 : vector<64x128xf32> to vector<1x1x8x8x128xf32>
    %c0_30 = arith.constant 0 : index
    %c0_31 = arith.constant 0 : index
    %c0_32 = arith.constant 0 : index
    %c0_33 = arith.constant 0 : index
    %c0_34 = arith.constant 0 : index
    %81 = vector.load %arg11[%c0_30, %c0_31, %c0_32, %c0_33, %c0_34] : memref<1x1x8x8x128xf32, #tpu.memory_space<vmem>>, vector<1x1x8x8x128xf32>
    tpu.vector_store %arg11[%c0_30, %c0_31, %c0_32, %c0_33, %c0_34], %80 {strides = array<i32>} : memref<1x1x8x8x128xf32, #tpu.memory_space<vmem>>, vector<1x1x8x8x128xf32>,
    return
  }
  func.func @transform_0(%arg0: i32, %arg1: i32, %arg2: i32) -> (i32, i32, i32, i32, i32) {
    %c0_i32 = arith.constant 0 : i32
    %c0_i32_0 = arith.constant 0 : i32
    %c0_i32_1 = arith.constant 0 : i32
    %c0_i32_2 = arith.constant 0 : i32
    %c0_i32_3 = arith.constant 0 : i32
    return %arg0, %c0_i32, %c0_i32_0, %c0_i32_1, %c0_i32_2 : i32, i32, i32, i32, i32
  }
  func.func @transform_1(%arg0: i32, %arg1: i32, %arg2: i32) -> (i32, i32, i32) {
    %c0_i32 = arith.constant 0 : i32
    %c0_i32_0 = arith.constant 0 : i32
    %c0_i32_1 = arith.constant 0 : i32
    %c0_i32_2 = arith.constant 0 : i32
    return %c0_i32, %c0_i32_0, %c0_i32_1 : i32, i32, i32
  }
  func.func @transform_2(%arg0: i32, %arg1: i32, %arg2: i32) -> (i32, i32) {
    %c0_i32 = arith.constant 0 : i32
    %c0_i32_0 = arith.constant 0 : i32
    %c0_i32_1 = arith.constant 0 : i32
    return %c0_i32, %c0_i32_0 : i32, i32
  }
  func.func @transform_3(%arg0: i32, %arg1: i32, %arg2: i32) -> (i32, i32) {
    %c0_i32 = arith.constant 0 : i32
    %c0_i32_0 = arith.constant 0 : i32
    %c0_i32_1 = arith.constant 0 : i32
    return %c0_i32, %c0_i32_0 : i32, i32
  }
  func.func @transform_4(%arg0: i32, %arg1: i32, %arg2: i32) -> (i32, i32) {
    %c0_i32 = arith.constant 0 : i32
    %c0_i32_0 = arith.constant 0 : i32
    %c0_i32_1 = arith.constant 0 : i32
    return %c0_i32, %c0_i32_0 : i32, i32
  }
  func.func @transform_5(%arg0: i32, %arg1: i32, %arg2: i32) -> (i32, i32) {
    %c0_i32 = arith.constant 0 : i32
    %c0_i32_0 = arith.constant 0 : i32
    %c0_i32_1 = arith.constant 0 : i32
    return %c0_i32, %c0_i32_0 : i32, i32
  }
  func.func @transform_6(%arg0: i32, %arg1: i32, %arg2: i32) -> (i32, i32) {
    %c0_i32 = arith.constant 0 : i32
    %c0_i32_0 = arith.constant 0 : i32
    %c0_i32_1 = arith.constant 0 : i32
    return %c0_i32, %c0_i32_0 : i32, i32
  }
  func.func @transform_7(%arg0: i32, %arg1: i32, %arg2: i32) -> (i32, i32, i32, i32, i32) {
    %c0_i32 = arith.constant 0 : i32
    %c0_i32_0 = arith.constant 0 : i32
    %c0_i32_1 = arith.constant 0 : i32
    return %arg0, %arg1, %arg2, %c0_i32, %c0_i32_0 : i32, i32, i32, i32, i32
  }
  func.func @transform_8(%arg0: i32, %arg1: i32, %arg2: i32) -> (i32, i32, i32, i32, i32) {
    %c0_i32 = arith.constant 0 : i32
    %c0_i32_0 = arith.constant 0 : i32
    %c0_i32_1 = arith.constant 0 : i32
    return %arg0, %arg1, %arg2, %c0_i32, %c0_i32_0 : i32, i32, i32, i32, i32
  }
}

module attributes {stable_mosaic.version = 11 : i64} {
  func.func @_conv1_bn_relu_kernel(%arg0: i32, %arg1: i32, %arg2: memref<1x1x8x8x128xf32, #tpu.memory_space<vmem>>, %arg3: memref<128x32xbf16, #tpu.memory_space<vmem>>, %arg4: memref<1x32xf32, #tpu.memory_space<vmem>>, %arg5: memref<1x32xf32, #tpu.memory_space<vmem>>, %arg6: memref<1x1x10x10x32xbf16, #tpu.memory_space<vmem>>) attributes {dimension_semantics = [#tpu.dimension_semantics<parallel>, #tpu.dimension_semantics<parallel>], iteration_bounds = array<i64: 2, 6>, scalar_prefetch = 0 : i64, scratch_operands = 0 : i64, tpu.core_type = #tpu.core_type<tc>, window_params = [{transform_indices = @transform_0, window_bounds = array<i64: 1, 1, 8, 8, 128>}, {pipeline_mode = #tpu.pipeline_mode<synchronous>, transform_indices = @transform_1, window_bounds = array<i64: 128, 32>}, {pipeline_mode = #tpu.pipeline_mode<synchronous>, transform_indices = @transform_2, window_bounds = array<i64: 1, 32>}, {pipeline_mode = #tpu.pipeline_mode<synchronous>, transform_indices = @transform_3, window_bounds = array<i64: 1, 32>}, {transform_indices = @transform_4, window_bounds = array<i64: 1, 1, 10, 10, 32>}]} {
    %cst = arith.constant 0.000000e+00 : bf16
    %0 = vector.broadcast %cst : bf16 to vector<1x1x10x10x32xbf16>
    %c0 = arith.constant 0 : index
    %c0_0 = arith.constant 0 : index
    %c0_1 = arith.constant 0 : index
    %c0_2 = arith.constant 0 : index
    %c0_3 = arith.constant 0 : index
    %1 = vector.load %arg6[%c0, %c0_0, %c0_1, %c0_2, %c0_3] : memref<1x1x10x10x32xbf16, #tpu.memory_space<vmem>>, vector<1x1x10x10x32xbf16>
    tpu.vector_store %arg6[%c0, %c0_0, %c0_1, %c0_2, %c0_3], %0 {strides = array<i32>} : memref<1x1x10x10x32xbf16, #tpu.memory_space<vmem>>, vector<1x1x10x10x32xbf16>,
    %c0_i32 = arith.constant 0 : i32
    %2 = arith.cmpi sgt, %arg1, %c0_i32 : i32
    %c5_i32 = arith.constant 5 : i32
    %3 = arith.cmpi slt, %arg1, %c5_i32 : i32
    %4 = arith.andi %2, %3 : i1
    %5 = arith.extui %4 : i1 to i32
    %c0_i32_4 = arith.constant 0 : i32
    %6 = arith.cmpi ne, %5, %c0_i32_4 : i32
    scf.if %6 {
      %c0_5 = arith.constant 0 : index
      %c0_6 = arith.constant 0 : index
      %c0_7 = arith.constant 0 : index
      %c0_8 = arith.constant 0 : index
      %c0_9 = arith.constant 0 : index
      %7 = vector.load %arg2[%c0_5, %c0_6, %c0_7, %c0_8, %c0_9] : memref<1x1x8x8x128xf32, #tpu.memory_space<vmem>>, vector<1x1x8x8x128xf32>
      %8 = vector.shape_cast %7 : vector<1x1x8x8x128xf32> to vector<64x128xf32>
      %9 = arith.truncf %8 : vector<64x128xf32> to vector<64x128xbf16>
      %c0_10 = arith.constant 0 : index
      %c0_11 = arith.constant 0 : index
      %10 = vector.load %arg3[%c0_10, %c0_11] : memref<128x32xbf16, #tpu.memory_space<vmem>>, vector<128x32xbf16>
      %cst_12 = arith.constant dense<0.000000e+00> : vector<64x32xf32>
      %11 = tpu.matmul %9, %10, %cst_12 {dimension_numbers = #tpu.dot_dimension_numbers<[1], [0], [0], [1], [0, 0, 1, 1], [], []>} : vector<64x128xbf16>, vector<128x32xbf16>, vector<64x32xf32> -> vector<64x32xf32>
      %c0_13 = arith.constant 0 : index
      %c0_14 = arith.constant 0 : index
      %12 = vector.load %arg4[%c0_13, %c0_14] : memref<1x32xf32, #tpu.memory_space<vmem>>, vector<1x32xf32>
      %13 = vector.broadcast %12 : vector<1x32xf32> to vector<64x32xf32>
      %14 = arith.mulf %11, %13 : vector<64x32xf32>
      %c0_15 = arith.constant 0 : index
      %c0_16 = arith.constant 0 : index
      %15 = vector.load %arg5[%c0_15, %c0_16] : memref<1x32xf32, #tpu.memory_space<vmem>>, vector<1x32xf32>
      %16 = vector.broadcast %15 : vector<1x32xf32> to vector<64x32xf32>
      %17 = arith.addf %14, %16 : vector<64x32xf32>
      %cst_17 = arith.constant 0.000000e+00 : f32
      %18 = vector.broadcast %cst_17 : f32 to vector<64x32xf32>
      %19 = arith.maximumf %17, %18 : vector<64x32xf32>
      %20 = vector.shape_cast %19 : vector<64x32xf32> to vector<8x8x32xf32>
      %21 = arith.truncf %20 : vector<8x8x32xf32> to vector<8x8x32xbf16>
      %c0_18 = arith.constant 0 : index
      %c0_19 = arith.constant 0 : index
      %c1 = arith.constant 1 : index
      %c1_20 = arith.constant 1 : index
      %c0_21 = arith.constant 0 : index
      %22 = vector.load %arg6[%c0_18, %c0_19, %c1, %c1_20, %c0_21] : memref<1x1x10x10x32xbf16, #tpu.memory_space<vmem>>, vector<1x1x8x8x32xbf16>
      %23 = vector.shape_cast %22 : vector<1x1x8x8x32xbf16> to vector<8x8x32xbf16>
      %24 = vector.shape_cast %21 : vector<8x8x32xbf16> to vector<1x1x8x8x32xbf16>
      tpu.vector_store %arg6[%c0_18, %c0_19, %c1, %c1_20, %c0_21], %24 {strides = array<i32>} : memref<1x1x10x10x32xbf16, #tpu.memory_space<vmem>>, vector<1x1x8x8x32xbf16>,
    } else {
    }
    return
  }
  func.func @transform_0(%arg0: i32, %arg1: i32) -> (i32, i32, i32, i32, i32) {
    %c1_i32 = arith.constant 1 : i32
    %0 = arith.subi %arg1, %c1_i32 : i32
    %c0_i32 = arith.constant 0 : i32
    %c3_i32 = arith.constant 3 : i32
    %1 = arith.maxsi %c0_i32, %0 : i32
    %2 = arith.minsi %c3_i32, %1 : i32
    %c0_i32_0 = arith.constant 0 : i32
    %c0_i32_1 = arith.constant 0 : i32
    %c0_i32_2 = arith.constant 0 : i32
    %c0_i32_3 = arith.constant 0 : i32
    return %arg0, %2, %c0_i32_0, %c0_i32_1, %c0_i32_2 : i32, i32, i32, i32, i32
  }
  func.func @transform_1(%arg0: i32, %arg1: i32) -> (i32, i32) {
    %c0_i32 = arith.constant 0 : i32
    %c0_i32_0 = arith.constant 0 : i32
    %c0_i32_1 = arith.constant 0 : i32
    return %c0_i32, %c0_i32_0 : i32, i32
  }
  func.func @transform_2(%arg0: i32, %arg1: i32) -> (i32, i32) {
    %c0_i32 = arith.constant 0 : i32
    %c0_i32_0 = arith.constant 0 : i32
    %c0_i32_1 = arith.constant 0 : i32
    return %c0_i32, %c0_i32_0 : i32, i32
  }
  func.func @transform_3(%arg0: i32, %arg1: i32) -> (i32, i32) {
    %c0_i32 = arith.constant 0 : i32
    %c0_i32_0 = arith.constant 0 : i32
    %c0_i32_1 = arith.constant 0 : i32
    return %c0_i32, %c0_i32_0 : i32, i32
  }
  func.func @transform_4(%arg0: i32, %arg1: i32) -> (i32, i32, i32, i32, i32) {
    %c0_i32 = arith.constant 0 : i32
    %c0_i32_0 = arith.constant 0 : i32
    %c0_i32_1 = arith.constant 0 : i32
    %c0_i32_2 = arith.constant 0 : i32
    return %arg0, %arg1, %c0_i32, %c0_i32_0, %c0_i32_1 : i32, i32, i32, i32, i32
  }
}

</mosaic_0001>

<bundles_post_ra>
// kernel: bottleneck_forward.2
= control target key start
LH: loop header
LB: loop body
LE: loop exit
PB: predicated region body
PF: predicated region fallthrough
CT: control target
= control target key end

     0   :  { %s1001_s15 = smov 0   ;;  %s1003_s16 = smov 0   ;;  %s1222_s0 = inlined_call_operand.vmem [shape: f32[2,4,8,8,128], index: 0, kind: input, shape index: {}]   ;;  %s1223_s1 = inlined_call_operand.vmem [shape: bf16[128,32], index: 1, kind: input, shape index: {}]   ;;  %s1224_s2 = inlined_call_operand.vmem [shape: f32[1,32], index: 2, kind: input, shape index: {}]   ;;  %s1225_s3 = inlined_call_operand.vmem [shape: f32[1,32], index: 3, kind: input, shape index: {}]   ;;  %s1226_s4 = inlined_call_operand.vmem [shape: bf16[2,6,10,10,32], index: 4, kind: output, shape index: {}]  }
   0x1   :  { %s1005_s17 = smov 0   ;;  %s1007_s18 = smov 0  }
   0x2   :  { %s1009_s19 = smov 0  }
   0x3 LB: > { %s23_s20 = sadd.s32 1, %s965_s17  ;;  %s26_s21 = sadd.s32 1, %s969_s18  ;;  %s973_s19 = sphi %s1009_s19, %s14_s19   ;;  %s969_s18 = sphi %s1007_s18, %s1235_s18   ;;  %s965_s17 = sphi %s1005_s17, %s1234_s17   ;;  %s961_s16 = sphi %s1003_s16, %s1233_s16   ;;  %s957_s15 = sphi %s1001_s15, %s1232_s15  }
   0x4   : > { %p24_p0 = scmp.ge.s32.totalorder %s23_s20, 6  ;;  %p755_p1 = scmp.ge.s32.totalorder %s973_s19, 1 }
   0x5   : > { %p202_p2 = scmp.lt.s32.totalorder %s973_s19, 13 }
   0x6   : > { %s1237_s20 = smov (%p24_p0, %s23_s20), 0  ;;  %s1239_s21 = smov (!%p24_p0, %s26_s21), %s969_s18 }
   0x7   : > { %p203_p3 = pnand %p755_p1, %p202_p2  ;;  %p28_p4 = scmp.ge.s32.totalorder %s1239_s21, 2 }
   0x8   : > { %s756_s22 = sadd.s32 (!%p203_p3), 4294967295, %s957_s15  ;;  %p246_p5 = scmp.lt.s32.totalorder (!%p203_p3), %s961_s16, 1  ;;  %vm270_vm0 = vcmask (!%p203_p3), 257024   ;;  %vm272_vm1 = vcmask (!%p203_p3), 253952   ;;  %v975_v0 = vmov (!%p203_p3), 0  }
   0x9   : > { %s1241_s21 = smov (%p28_p4, %s1239_s21), 0  ;;  %206 = sbr.rel (%p203_p3) target bundleno = 290 (0x122), region = 36 }
   0xa   : > { %p242_p6 = scmp.gt.s32.totalorder (!%p203_p3), %s756_s22, 0  ;;  %p757_p7 = scmp.lt.s32.totalorder (!%p203_p3), %s756_s22, 3 }
   0xb   : > { %p262_p8 = scmp.lt.s32.totalorder (!%p203_p3), %s957_s15, 5  ;;  %p292_p10 = scmp.gt.s32.totalorder (!%p203_p3), %s957_s15, 0 }
   0xd   : > { %p1037_p11 = pnand (!%p203_p3), %p292_p10, %p262_p8 }
  0x10   : > { %s1243_s16 = smov (!%p246_p5, %s961_s16), 1  ;;  %s1245_s22 = smov (!%p242_p6, %s756_s22), 0 }
  0x11   : > { %s763_s23 = sshll.u32 %s1243_s16, 5  ;;  %s1247_s22 = smov (!%p757_p7, %s1245_s22), 3  ;;  %v927_v1 = vld [vmem:[%s1223_s1] sm:$0xff] (!%p1037_p11)   ;;  %v928_v2 = vld [vmem:[%s1223_s1 + $0x8] sm:$0xff] (!%p1037_p11)   ;;  %v929_v3 = vld [vmem:[%s1223_s1 + $0x10] sm:$0xff] (!%p1037_p11)  }
  0x12   : > { %s263_s24 = scalar_select %p262_p8, %s957_s15, 5 }
  0x13   : > { %p248_p9 = scmp.lt.s32.totalorder %s1247_s22, 3  ;;  %s885_s25 = smul.u32 120, %s1243_s16  ;;  %844 = vmatprep.subr.bf16.mxu0 (!%p1037_p11), %v927_v1  ;;  %868 = vmatprep.subr.bf16.mxu1 (!%p1037_p11), %v927_v1  ;;  %v930_v4 = vld [vmem:[%s1223_s1 + $0x18] sm:$0xff] (!%p1037_p11)   ;;  %v931_v11 = vld [vmem:[%s1223_s1 + $0x20] sm:$0xff] (!%p1037_p11)   ;;  %v932_v12 = vld [vmem:[%s1223_s1 + $0x28] sm:$0xff] (!%p1037_p11)  }
  0x14   : > { %s884_s26 = smul.u32 20, %s263_s24  ;;  %845 = vmatpush3.bf16.msra.mxu0 (!%p1037_p11), %v927_v1  ;;  %876 = vmatpush3.bf16.msra.mxu1 (!%p1037_p11), %v927_v1  ;;  %v933_v13 = vld [vmem:[%s1223_s1 + $0x30] sm:$0xff] (!%p1037_p11)   ;;  %v934_v14 = vld [vmem:[%s1223_s1 + $0x38] sm:$0xff] (!%p1037_p11)   ;;  %v774_v21 = vld [vmem:[%s1224_s2] ss:$0 sm:$0xff] (!%p1037_p11) }
  0x15   : > { %s1249_s22 = smov (!%p248_p9, %s1247_s22), 3  ;;  %846 = vmatprep.subr.bf16.mxu0 (!%p1037_p11), %v928_v2  ;;  %869 = vmatprep.subr.bf16.mxu1 (!%p1037_p11), %v928_v2  ;;  %v775_v23 = vld [vmem:[%s1225_s3] ss:$0 sm:$0xff] (!%p1037_p11)  ;;  %vm591_vm2 = vsmask.f32 (!%p1037_p11), 7938 }
  0x16   : > { %s266_s27 = sadd.s32 %s885_s25, %s884_s26  ;;  %s762_s29 = sshll.u32 %s1249_s22, 3  ;;  %vm597_vm3 = vsmask.f32 (!%p1037_p11), 256  ;;  %vm1135_vm4 = vmand (!%p1037_p11), %vm270_vm0, %vm591_vm2 }
  0x17   : > { %s765_s30 = sshll.u32 %s266_s27, 2  ;;  %s252_s5 = sadd.s32 %s763_s23, %s762_s29  ;;  %vm1143_vm5 = vmand (!%p1037_p11), %vm272_vm1, %vm597_vm3 }
  0x18   : > { %s1044_s8 = scalar_lea.vmem %s1226_s4, %s765_s30  ;;  %s764_s9 = sshll.u32 %s252_s5, 3  ;;  %847 = vmatpush3.bf16.msra.mxu0 (!%p1037_p11), %v928_v2  ;;  %877 = vmatpush3.bf16.msra.mxu1 (!%p1037_p11), %v928_v2 }
  0x19   : > { %271 = vst.msk [vmem:[%s1044_s8] sm:$0xf] %vm270_vm0, %v975_v0  ;;  %274 = vst.msk [vmem:[%s1044_s8 + $0x8] sm:$0xf] %vm270_vm0, %v975_v0  ;;  %s1089_s12 = scalar_lea.vmem %s1222_s0, %s764_s9  ;;  %848 = vmatprep.subr.bf16.mxu0 (!%p1037_p11), %v929_v3  ;;  %870 = vmatprep.subr.bf16.mxu1 (!%p1037_p11), %v929_v3 }
  0x1a   : > { %276 = vst.msk [vmem:[%s1044_s8 + $0x10] sm:$0xf] %vm270_vm0, %v975_v0  ;;  %278 = vst.msk [vmem:[%s1044_s8 + $0x18] sm:$0xf] %vm270_vm0, %v975_v0  ;;  %v298_v5 = vld [vmem:[%s1089_s12] sm:$0xff] (!%p1037_p11)  ;;  %v299_v6 = vld [vmem:[%s1089_s12 + $0x8] sm:$0xff] (!%p1037_p11) }
  0x1b   : > { %280 = vst.msk [vmem:[%s1044_s8 + $0x20] sm:$0xf] %vm270_vm0, %v975_v0  ;;  %282 = vst.msk [vmem:[%s1044_s8 + $0x28] sm:$0xf] %vm270_vm0, %v975_v0  ;;  %v302_v7 = vld [vmem:[%s1089_s12 + $0x20] sm:$0xff] (!%p1037_p11)  ;;  %v306_v8 = vpack.c.bf16 (!%p1037_p11), %v299_v6, %v298_v5  ;;  %v303_v9 = vld [vmem:[%s1089_s12 + $0x28] sm:$0xff] (!%p1037_p11) }
  0x1c   : > { %284 = vst.msk [vmem:[%s1044_s8 + $0x30] sm:$0xf] %vm270_vm0, %v975_v0  ;;  %286 = vst.msk [vmem:[%s1044_s8 + $0x38] sm:$0xf] %vm270_vm0, %v975_v0  ;;  %297 = sbr.rel (%p1037_p11) target bundleno = 290 (0x122), region = 40  ;;  %v308_v10 = vpack.c.bf16 (!%p1037_p11), %v303_v9, %v302_v7  ;;  %849 = vmatpush3.bf16.msra.mxu0 (!%p1037_p11), %v929_v3  ;;  %878 = vmatpush3.bf16.msra.mxu1 (!%p1037_p11), %v929_v3  ;;  %v300_v15 = vld [vmem:[%s1089_s12 + $0x10] sm:$0xff] (!%p1037_p11) }
  0x1d   : > { %288 = vst.msk [vmem:[%s1044_s8 + $0x40] sm:$0xf] %vm270_vm0, %v975_v0  ;;  %290 = vst.msk [vmem:[%s1044_s8 + $0x48] sm:$0xf] %vm270_vm0, %v975_v0  ;;  %850 = vmatprep.subr.bf16.mxu0 (!%p1037_p11), %v930_v4  ;;  %871 = vmatprep.subr.bf16.mxu1 (!%p1037_p11), %v930_v4  ;;  %v301_v16 = vld [vmem:[%s1089_s12 + $0x18] sm:$0xff] (!%p1037_p11)  ;;  %v304_v17 = vld [vmem:[%s1089_s12 + $0x30] sm:$0xff] (!%p1037_p11) }
  0x1e   : > { %273 = vst.msk [vmem:[%s1044_s8 + $0x4] sm:$0x1] %vm272_vm1, %v975_v0  ;;  %275 = vst.msk [vmem:[%s1044_s8 + $0xc] sm:$0x1] %vm272_vm1, %v975_v0  ;;  %860 = vmatprep.mubr.bf16.mxu0 (!%p1037_p11), %v306_v8  ;;  %864 = vmatprep.mubr.bf16.mxu1 (!%p1037_p11), %v308_v10  ;;  %v305_v18 = vld [vmem:[%s1089_s12 + $0x38] sm:$0xff] (!%p1037_p11)  ;;  %v307_v19 = vpack.c.bf16 (!%p1037_p11), %v301_v16, %v300_v15 }
  0x1f   : > { %277 = vst.msk [vmem:[%s1044_s8 + $0x14] sm:$0x1] %vm272_vm1, %v975_v0  ;;  %279 = vst.msk [vmem:[%s1044_s8 + $0x1c] sm:$0x1] %vm272_vm1, %v975_v0  ;;  %v309_v20 = vpack.c.bf16 (!%p1037_p11), %v305_v18, %v304_v17 }
  0x20   : > { %281 = vst.msk [vmem:[%s1044_s8 + $0x24] sm:$0x1] %vm272_vm1, %v975_v0  ;;  %283 = vst.msk [vmem:[%s1044_s8 + $0x2c] sm:$0x1] %vm272_vm1, %v975_v0  ;;  %851 = vmatpush3.bf16.msra.mxu0 (!%p1037_p11), %v930_v4  ;;  %879 = vmatpush3.bf16.msra.mxu1 (!%p1037_p11), %v930_v4 }
  0x21   : > { %285 = vst.msk [vmem:[%s1044_s8 + $0x34] sm:$0x1] %vm272_vm1, %v975_v0  ;;  %287 = vst.msk [vmem:[%s1044_s8 + $0x3c] sm:$0x1] %vm272_vm1, %v975_v0  ;;  %852 = vmatprep.subr.bf16.mxu0 (!%p1037_p11), %v931_v11  ;;  %872 = vmatprep.subr.bf16.mxu1 (!%p1037_p11), %v931_v11  ;;  %v792_v63 = vld [vmem:[%s1044_s8 + $0x18] sm:$0xf] (!%p1037_p11) }
  0x22   : > { %289 = vst.msk [vmem:[%s1044_s8 + $0x44] sm:$0x1] %vm272_vm1, %v975_v0  ;;  %291 = vst.msk [vmem:[%s1044_s8 + $0x4c] sm:$0x1] %vm272_vm1, %v975_v0 }
  0x23   : > { %v808_v8 = vld [vmem:[%s1044_s8 + $0x38] sm:$0xf] }
  0x24   : > { %853 = vmatpush3.bf16.msra.mxu0 %v931_v11  ;;  %880 = vmatpush3.bf16.msra.mxu1 %v931_v11 }
  0x25   : > { %854 = vmatprep.subr.bf16.mxu0 %v932_v12  ;;  %873 = vmatprep.subr.bf16.mxu1 %v932_v12  ;;  %v786_v15 = vld [vmem:[%s1044_s8 + $0xc] sm:$0x1] }
  0x26   : > { %v794_v0 = vld [vmem:[%s1044_s8 + $0x1c] sm:$0x1] }
  0x28   : > { %855 = vmatpush3.bf16.msra.mxu0 %v932_v12  ;;  %881 = vmatpush3.bf16.msra.mxu1 %v932_v12  ;;  %v810_v9 = vld [vmem:[%s1044_s8 + $0x3c] sm:$0x1] }
  0x29   : > { %856 = vmatprep.subr.bf16.mxu0 %v933_v13  ;;  %874 = vmatprep.subr.bf16.mxu1 %v933_v13 }
  0x2c   : > { %857 = vmatpush3.bf16.msra.mxu0 %v933_v13  ;;  %882 = vmatpush3.bf16.msra.mxu1 %v933_v13 }
  0x2d   : > { %858 = vmatprep.subr.bf16.mxu0 %v934_v14  ;;  %875 = vmatprep.subr.bf16.mxu1 %v934_v14 }
  0x30   : > { %859 = vmatpush3.bf16.msra.mxu0 %v934_v14  ;;  %883 = vmatpush3.bf16.msra.mxu1 %v934_v14  ;;  %v784_v14 = vld [vmem:[%s1044_s8 + $0x8] sm:$0xf] }
  0x33   : > { %861 = vmatmul.mubr.bf16.vlgmr.msra.gmra.mrb[0].mxu0 %v307_v19  ;;  %865 = vmatmul.mubr.bf16.vlgmr.msra.gmra.mrb[0].mxu1 %v309_v20 }
 0x106   : > { %v862_v22 = vpop.f32.mrb[0].mxu0  ;;  %v866_v24 = vpop.f32.mrb[0].mxu1 }
 0x107   : > { %v448_v25 = vmul.f32 %v862_v22, %v774_v21  ;;  %v452_v26 = vmul.f32 %v866_v24, %v774_v21  ;;  %v408_v27 = vpop.f32.mrb[1].mxu0  ;;  %v424_v28 = vpop.f32.mrb[1].mxu1  ;;  %v802_v24 = vld [vmem:[%s1044_s8 + $0x2c] sm:$0x1] }
 0x108   : > { %v446_v29 = vmul.f32 %v774_v21, %v408_v27  ;;  %v450_v30 = vmul.f32 %v774_v21, %v424_v28  ;;  %v863_v31 = vpop.f32.mrb[2].mxu0  ;;  %v867_v32 = vpop.f32.mrb[2].mxu1 }
 0x109   : > { %v463_v33 = vadd.f32 %v775_v23, %v448_v25  ;;  %v467_v34 = vadd.f32 %v775_v23, %v452_v26  ;;  %v449_v35 = vmul.f32 %v863_v31, %v774_v21  ;;  %v453_v36 = vmul.f32 %v867_v32, %v774_v21  ;;  %v411_v37 = vpop.f32.mrb[3].mxu0  ;;  %v427_v38 = vpop.f32.mrb[3].mxu1 }
 0x10a   : > { %v461_v39 = vadd.f32 %v775_v23, %v446_v29  ;;  %v465_v40 = vadd.f32 %v775_v23, %v450_v30  ;;  %v447_v41 = vmul.f32 %v774_v21, %v411_v37  ;;  %v451_v42 = vmul.f32 %v774_v21, %v427_v38 }
 0x10b   : > { %v471_v43 = vmax.f32 %v463_v33, 0.0  ;;  %v475_v44 = vmax.f32 %v467_v34, 0.0  ;;  %v464_v45 = vadd.f32 %v775_v23, %v449_v35  ;;  %v468_v46 = vadd.f32 %v775_v23, %v453_v36 }
 0x10c   : > { %v469_v47 = vmax.f32 %v461_v39, 0.0  ;;  %v473_v48 = vmax.f32 %v465_v40, 0.0  ;;  %v462_v49 = vadd.f32 %v775_v23, %v447_v41  ;;  %v466_v50 = vadd.f32 %v775_v23, %v451_v42  ;;  %v800_v23 = vld [vmem:[%s1044_s8 + $0x28] sm:$0xf]  ;;  %v796_v39 = vld [vmem:[%s1044_s8 + $0x20] sm:$0xf] }
 0x10d   : > { %v826_v51 = vpack.c.bf16 %v471_v43, %v471_v43  ;;  %v830_v52 = vpack.c.bf16 %v475_v44, %v475_v44  ;;  %v472_v53 = vmax.f32 %v464_v45, 0.0  ;;  %v476_v54 = vmax.f32 %v468_v46, 0.0  ;;  %v798_v40 = vld [vmem:[%s1044_s8 + $0x24] sm:$0x1]  ;;  %v812_v41 = vld [vmem:[%s1044_s8 + $0x40] sm:$0xf] }
 0x10e   : > { %v824_v55 = vpack.c.bf16 %v469_v47, %v469_v47  ;;  %v828_v56 = vpack.c.bf16 %v473_v48, %v473_v48  ;;  %v470_v57 = vmax.f32 %v462_v49, 0.0  ;;  %v474_v58 = vmax.f32 %v466_v50, 0.0  ;;  %v814_v42 = vld [vmem:[%s1044_s8 + $0x44] sm:$0x1]  ;;  %v788_v49 = vld [vmem:[%s1044_s8 + $0x10] sm:$0xf] }
 0x10f   : > { %v526_v59 = vshrl.u32 %v826_v51, 16  ;;  %v529_v60 = vshll.u32 %v826_v51, 16  ;;  %v558_v61 = vshrl.u32 %v830_v52, 16  ;;  %v561_v62 = vshll.u32 %v830_v52, 16  ;;  %v790_v52 = vld [vmem:[%s1044_s8 + $0x14] sm:$0x1] }
 0x110   : > { %v510_v1 = vshrl.u32 %v824_v55, 16  ;;  %v513_v2 = vshll.u32 %v824_v55, 16  ;;  %v542_v3 = vshrl.u32 %v828_v56, 16  ;;  %v545_v4 = vshll.u32 %v828_v56, 16 }
 0x111   : > { %v528_v5 = vrot.slane %v526_v59, 7  ;;  %v560_v7 = vrot.slane %v558_v61, 7  ;;  %v827_v10 = vpack.c.bf16 %v472_v53, %v472_v53  ;;  %v831_v11 = vpack.c.bf16 %v476_v54, %v476_v54  ;;  %v804_v59 = vld [vmem:[%s1044_s8 + $0x30] sm:$0xf] }
 0x112   : > { %v512_v13 = vrot.slane %v510_v1, 7  ;;  %v544_v16 = vrot.slane %v542_v3, 7  ;;  %v825_v17 = vpack.c.bf16 %v470_v57, %v470_v57  ;;  %v829_v18 = vpack.c.bf16 %v474_v58, %v474_v58 }
 0x113   : > { %v531_v19 = vor.u32 %v529_v60, %v528_v5  ;;  %v532_v20 = vrot.slane %v528_v5, 4  ;;  %v563_v21 = vor.u32 %v561_v62, %v560_v7  ;;  %v564_v22 = vrot.slane %v560_v7, 4  ;;  %v806_v60 = vld [vmem:[%s1044_s8 + $0x34] sm:$0x1] }
 0x114   : > { %v515_v25 = vor.u32 %v513_v2, %v512_v13  ;;  %v516_v26 = vrot.slane %v512_v13, 4  ;;  %v547_v27 = vor.u32 %v545_v4, %v544_v16  ;;  %v548_v28 = vrot.slane %v544_v16, 4 }
 0x115   : > { %v609_v29 = vsel %vm1135_vm4, %v531_v19, %v792_v63  ;;  %v612_v30 = vsel %vm1143_vm5, %v532_v20, %v794_v0  ;;  %v633_v31 = vsel %vm1135_vm4, %v563_v21, %v808_v8  ;;  %v636_v32 = vsel %vm1143_vm5, %v564_v22, %v810_v9 }
 0x116   : > { %793 = vst [vmem:[%s1044_s8 + $0x18] sm:$0xf] %v609_v29  ;;  %795 = vst [vmem:[%s1044_s8 + $0x1c] sm:$0x1] %v612_v30  ;;  %v594_v33 = vsel %vm1135_vm4, %v515_v25, %v784_v14  ;;  %v600_v34 = vsel %vm1143_vm5, %v516_v26, %v786_v15  ;;  %v621_v35 = vsel %vm1135_vm4, %v547_v27, %v800_v23  ;;  %v534_v37 = vshrl.u32 %v827_v10, 16 }
 0x117   : > { %809 = vst [vmem:[%s1044_s8 + $0x38] sm:$0xf] %v633_v31  ;;  %811 = vst [vmem:[%s1044_s8 + $0x3c] sm:$0x1] %v636_v32  ;;  %v624_v36 = vsel %vm1143_vm5, %v548_v28, %v802_v24  ;;  %v566_v38 = vshrl.u32 %v831_v11, 16  ;;  %v518_v43 = vshrl.u32 %v825_v17, 16 }
 0x118   : > { %785 = vst [vmem:[%s1044_s8 + $0x8] sm:$0xf] %v594_v33  ;;  %787 = vst [vmem:[%s1044_s8 + $0xc] sm:$0x1] %v600_v34  ;;  %v550_v44 = vshrl.u32 %v829_v18, 16  ;;  %v536_v45 = vrot.slane %v534_v37, 7 }
 0x119   : > { %801 = vst [vmem:[%s1044_s8 + $0x28] sm:$0xf] %v621_v35  ;;  %803 = vst [vmem:[%s1044_s8 + $0x2c] sm:$0x1] %v624_v36  ;;  %v537_v46 = vshll.u32 %v827_v10, 16  ;;  %v568_v47 = vrot.slane %v566_v38, 7 }
 0x11a   : > { %v569_v48 = vshll.u32 %v831_v11, 16  ;;  %v520_v50 = vrot.slane %v518_v43, 7  ;;  %v521_v51 = vshll.u32 %v825_v17, 16  ;;  %v552_v53 = vrot.slane %v550_v44, 7 }
 0x11b   : > { %v553_v54 = vshll.u32 %v829_v18, 16  ;;  %v539_v55 = vor.u32 %v537_v46, %v536_v45  ;;  %v540_v56 = vrot.slane %v536_v45, 4  ;;  %v572_v58 = vrot.slane %v568_v47, 4 }
 0x11c   : > { %v571_v57 = vor.u32 %v569_v48, %v568_v47  ;;  %v523_v61 = vor.u32 %v521_v51, %v520_v50  ;;  %v524_v62 = vrot.slane %v520_v50, 4  ;;  %v556_v0 = vrot.slane %v552_v53, 4 }
 0x11d   : > { %v555_v63 = vor.u32 %v553_v54, %v552_v53  ;;  %v615_v1 = vsel %vm1135_vm4, %v539_v55, %v796_v39  ;;  %v618_v2 = vsel %vm1143_vm5, %v540_v56, %v798_v40  ;;  %v642_v4 = vsel %vm1143_vm5, %v572_v58, %v814_v42 }
 0x11e   : > { %v639_v3 = vsel %vm1135_vm4, %v571_v57, %v812_v41  ;;  %797 = vst [vmem:[%s1044_s8 + $0x20] sm:$0xf] %v615_v1  ;;  %799 = vst [vmem:[%s1044_s8 + $0x24] sm:$0x1] %v618_v2  ;;  %v603_v5 = vsel %vm1135_vm4, %v523_v61, %v788_v49  ;;  %v606_v7 = vsel %vm1143_vm5, %v524_v62, %v790_v52 }
 0x11f   : > { %813 = vst [vmem:[%s1044_s8 + $0x40] sm:$0xf] %v639_v3  ;;  %815 = vst [vmem:[%s1044_s8 + $0x44] sm:$0x1] %v642_v4  ;;  %v627_v8 = vsel %vm1135_vm4, %v555_v63, %v804_v59  ;;  %v630_v9 = vsel %vm1143_vm5, %v556_v0, %v806_v60 }
 0x120   : > { %789 = vst [vmem:[%s1044_s8 + $0x10] sm:$0xf] %v603_v5  ;;  %791 = vst [vmem:[%s1044_s8 + $0x14] sm:$0x1] %v606_v7 }
 0x121   : > { %805 = vst [vmem:[%s1044_s8 + $0x30] sm:$0xf] %v627_v8  ;;  %807 = vst [vmem:[%s1044_s8 + $0x34] sm:$0x1] %v630_v9 }
 0x122 PF: > { %s14_s19 = sadd.s32 1, %s973_s19   ;;  %s1232_s15 = smov %s965_s17 }
 0x123   : > { %p11_p12 = scmp.ge.s32.totalorder %s14_s19, 14   ;;  %s1233_s16 = smov %s969_s18 }
 0x124   : > { %s1234_s17 = smov %s1237_s20  ;;  %s1235_s18 = smov %s1241_s21 }
 0x125   :  { %13 = sbr.rel (!%p11_p12) target bundleno = 3 (0x3), region = 71 }

// kernel: bottleneck_forward.3
= control target key start
LH: loop header
LB: loop body
LE: loop exit
PB: predicated region body
PF: predicated region fallthrough
CT: control target
= control target key end

     0   :  { %13 = vsyncpa [#allocation3], 0  ;;  %s4972_s0 = inlined_call_operand.vmem [shape: bf16[2,6,10,10,32], index: 0, kind: input, shape index: {}]   ;;  %s4973_s1 = inlined_call_operand.vmem [shape: bf16[3,288,32], index: 1, kind: input, shape index: {}]   ;;  %s4974_s2 = inlined_call_operand.vmem [shape: f32[1,32], index: 2, kind: input, shape index: {}]   ;;  %s4975_s3 = inlined_call_operand.vmem [shape: f32[1,32], index: 3, kind: input, shape index: {}]   ;;  %s4976_s4 = inlined_call_operand.vmem [shape: bf16[32,128], index: 4, kind: input, shape index: {}]   ;;  %s4977_s5 = inlined_call_operand.vmem [shape: f32[1,128], index: 5, kind: input, shape index: {}]   ;;  %s4978_s6 = inlined_call_operand.vmem [shape: f32[1,128], index: 6, kind: input, shape index: {}]   ;;  %s4979_s7 = inlined_call_operand.vmem [shape: f32[2,4,8,8,128], index: 7, kind: input, shape index: {}]   ;;  %s4980_s8 = inlined_call_operand.hbm [shape: f32[2,4,8,8,128], index: 8, kind: output, shape index: {}]  }
   0x1   :  { %15 = vsyncpa [#allocation3 + $0x1], 0  ;;  %s3698_s27 = smov 0   ;;  %s3700_s28 = smov 0  }
   0x2   :  { %s3702_s29 = smov 0   ;;  %s3704_s30 = smov 0  }
   0x3   :  { %s3706_s9 = smov 0   ;;  %s3708_s10 = smov 0  }
   0x4   :  { %s3710_s11 = smov 0   ;;  %s3712_s12 = smov 0  }
   0x5 LB: > { %4986 = sst [smem:[#allocation5_spill]] %s3625_s29  ;;  %s2862_s13 = sadd.s32 4294967295, %s3645_s12   ;;  %s3645_s12 = sphi %s3712_s12, %s21_s12   ;;  %s3641_s11 = sphi %s3710_s11, %s5000_s11   ;;  %s3637_s10 = sphi %s3708_s10, %s4999_s10   ;;  %s3633_s9 = sphi %s3706_s9, %s4998_s9   ;;  %s3629_s30 = sphi %s3704_s30, %s4997_s30   ;;  %s3625_s29 = sphi %s3702_s29, %s4996_s29   ;;  %s3621_s28 = sphi %s3700_s28, %s5002_s28   ;;  %s3617_s27 = sphi %s3698_s27, %s5001_s27  }
   0x6   : > { %4987 = sst [smem:[#allocation6_spill]] %s3637_s10  ;;  %s2863_s14 = sadd.s32 4294967294, %s3645_s12  }
   0x7   : > { %4988 = sst [smem:[#allocation7_spill]] %s3641_s11  ;;  %s36_s15 = sadd.s32 1, %s3637_s10 }
   0x8   : > { %p38_p0 = scmp.ge.s32.totalorder %s36_s15, 4  ;;  %s40_s16 = sadd.s32 1, %s3641_s11 }
   0x9   : > { %p243_p1 = scmp.ne.s32.totalorder %s3625_s29, %s3621_s28  ;;  %p244_p2 = scmp.eq.s32.totalorder %s2862_s13, 7 }
   0xa   : > { %s5004_s15 = smov (%p38_p0, %s36_s15), 0  ;;  %s5006_s16 = smov (!%p38_p0, %s40_s16), %s3641_s11 }
   0xb   : > { %4989 = sst [smem:[#allocation8_spill]] %s5004_s15  ;;  %s227_s17 = ssub.s32 %s3637_s10, %s5004_s15 }
   0xc   : > { %p3749_p3 = por %p244_p2, %p243_p1  ;;  %p42_p4 = scmp.ge.s32.totalorder %s5006_s16, 2 }
   0xd   : > { %p249_p5 = scmp.ne.s32.totalorder %s3621_s28, %s3617_s27  ;;  %p250_p6 = scmp.eq.s32.totalorder %s2863_s14, 7 }
   0xe   : > { %p2866_p7 = scmp.ge.s32.totalorder %s3645_s12, 1  ;;  %s5008_s16 = smov (%p42_p4, %s5006_s16), 0 }
   0xf   : > { %4991 = sst [smem:[#allocation9_spill]] %s5008_s16  ;;  %p3758_p8 = por %p250_p6, %p249_p5 }
  0x10   : > { %p311_p9 = scmp.lt.s32.totalorder %s3645_s12, 9  ;;  %s226_s20 = ssub.s32 %s3641_s11, %s5008_s16 }
  0x11   : > { %s233_s21 = sadd.s32 1, %s3625_s29  ;;  %s228_s22 = sor.u32 %s227_s17, %s226_s20 }
  0x12   : > { %p312_p10 = pnand %p2866_p7, %p311_p9  ;;  %p231_p11 = scmp.eq.s32.totalorder %s228_s22, 0 }
  0x13   : > { %p358_p12 = scmp.lt.s32.totalorder (!%p312_p10), %s3633_s9, 1  ;;  %v3456_v0 = vld [vmem:[%s4973_s1 + $0xd0] sm:$0xff] (!%p312_p10)   ;;  %v3458_v2 = vld [vmem:[%s4973_s1 + $0xd8] sm:$0xff] (!%p312_p10)   ;;  %v3461_v4 = vld [vmem:[%s4973_s1 + $0xe0] sm:$0xff] (!%p312_p10)   ;;  %s3648_s16 = smov (!%p312_p10), 32   ;;  %vm680_vm0 = vcmask (!%p312_p10), 261120  }
  0x14   : > { %s3767_s23 = scalar_select %p231_p11, %s3625_s29, %s233_s21  }
  0x15   : > { %315 = sbr.rel (%p312_p10) target bundleno = 907 (0x38b), region = 52  ;;  %v3457_v1 = vld [vmem:[%s4973_s1 + $0x90] sm:$0xff] (!%p312_p10)   ;;  %3121 = vmatprep.subr.bf16.mxu0 (!%p312_p10), %v3456_v0  ;;  %v3459_v3 = vld [vmem:[%s4973_s1 + $0x98] sm:$0xff] (!%p312_p10)   ;;  %v3462_v5 = vld [vmem:[%s4973_s1 + $0xa0] sm:$0xff] (!%p312_p10)   ;;  %s3647_s29 = smov (!%p312_p10), 64   ;;  %vm705_vm1 = vcmask (!%p312_p10), 523264  }
  0x16   : > { %4993 = sst [smem:[#allocation10_spill]] %s3767_s23  ;;  %s3120_s21 = smul.u32 (!%p312_p10), 80, %s3629_s30  ;;  %3122 = vmatpush3.bf16.msra.mxu0 (!%p312_p10), %v3457_v1  ;;  %v3463_v6 = vld [vmem:[%s4973_s1 + $0xe8] sm:$0xff] (!%p312_p10)   ;;  %v3464_v27 = vld [vmem:[%s4973_s1 + $0x110] sm:$0xff] (!%p312_p10)   ;;  %v3467_v47 = vld [vmem:[%s4973_s1 + $0x118] sm:$0xff] (!%p312_p10)   ;;  %vm722_vm2 = vcmask (!%p312_p10), 785408  }
  0x17   : > { %3123 = vmatprep.subr.bf16.mxu0 (!%p312_p10), %v3458_v2  ;;  %3265 = vmatprep.subr.bf16.mxu1 (!%p312_p10), %v3464_v27  ;;  %v3465_v34 = vld [vmem:[%s4973_s1 + $0xa8] sm:$0xff] (!%p312_p10)   ;;  %v3466_v44 = vld [vmem:[%s4973_s1 + $0xf0] sm:$0xff] (!%p312_p10)   ;;  %v3472_v58 = vld [vmem:[%s4973_s1 + $0xf8] sm:$0xff] (!%p312_p10)   ;;  %s3649_s15 = smov (!%p312_p10), 96   ;;  %p366_p13 = scmp.lt.s32.totalorder (!%p312_p10), %s3629_s30, 3 }
  0x18   : > { %3266 = vmatpush3.bf16.msra.mxu1 (!%p312_p10), %v3464_v27  ;;  %v3468_v53 = vld [vmem:[%s4973_s1 + $0xb0] sm:$0xff] (!%p312_p10)   ;;  %v3473_v62 = vld [vmem:[%s4973_s1 + $0x40] sm:$0xff] (!%p312_p10)   ;;  %v3474_v0 = vld [vmem:[%s4973_s1 + $0xb8] sm:$0xff] (!%p312_p10)   ;;  %s3650_s23 = smov (!%p312_p10), [#allocation2]  }
  0x19   : > { %3267 = vmatprep.subr.bf16.mxu1 (!%p312_p10), %v3467_v47 }
  0x1a   : > { %3124 = vmatpush3.bf16.msra.mxu0 (!%p312_p10), %v3459_v3 }
  0x1b   : > { %3125 = vmatprep.subr.bf16.mxu0 (!%p312_p10), %v3461_v4 }
  0x1c   : > { %s3777_s14 = scalar_select %p358_p12, %s3633_s9, 1  ;;  %3268 = vmatpush3.bf16.msra.mxu1 %v3467_v47  ;;  %v3482_v47 = vld [vmem:[%s4973_s1 + $0xc8] sm:$0xff]  }
  0x1d   : > { %3167 = vmatprep.subr.bf16.mxu1 %v3473_v62  ;;  %s367_s13 = scalar_select %p366_p13, %s3629_s30, 3 }
  0x1e   : > { %s3353_s22 = smul.u32 480, %s3777_s14  ;;  %3126 = vmatpush3.bf16.msra.mxu0 %v3462_v5  ;;  %s2870_s20 = sshll.u32 %s3777_s14, 5 }
  0x1f   : > { %3127 = vmatprep.subr.bf16.mxu0 %v3463_v6  ;;  %s2869_s17 = sshll.u32 %s367_s13, 3  ;;  %s3115_s13 = sshll.u32 %s3629_s30, 3 }
  0x20   : > { %s362_s11 = scalar_lea.vmem %s4972_s0, %s3353_s22  ;;  %s355_s22 = sand.u32 1, %s3621_s28  }
  0x21   : > { %s3796_s10 = scalar_lea.vmem %s362_s11, %s3120_s21  ;;  %s373_s11 = sadd.s32 %s2870_s20, %s2869_s17 }
  0x22   : > { %v411_v7 = vld [vmem:[%s3796_s10 + $0x68] sm:$0xf]  ;;  %v412_v8 = vld [vmem:[%s3796_s10 + $0x6c] sm:$0x1]  ;;  %v409_v9 = vld [vmem:[%s3796_s10 + $0x60] sm:$0xf]  ;;  %3128 = vmatpush3.bf16.msra.mxu0 %v3465_v34 }
  0x23   : > { %v3804_v10 = vcombine.low %v411_v7, %v411_v7  ;;  %v410_v11 = vld [vmem:[%s3796_s10 + $0x64] sm:$0x1]  ;;  %v3807_v12 = vcombine.low %v409_v9, %v409_v9  ;;  %v3810_v13 = vld [vmem:[%s3796_s10 + $0x58] sm:$0xf]  ;;  %v408_v14 = vld [vmem:[%s3796_s10 + $0x5c] sm:$0x1]  ;;  %v3813_v15 = vcombine.low %v411_v7, %v412_v8  ;;  %3129 = vmatprep.subr.bf16.mxu0 %v3466_v44 }
  0x24   : > { %v2894_v16 = vcombine.low %v409_v9, %v410_v11  ;;  %v2893_v17 = vcombine.low %v3810_v13, %v408_v14  ;;  %v3817_v18 = vld [vmem:[%s3796_s10 + $0x50] sm:$0xf]  ;;  %v406_v19 = vld [vmem:[%s3796_s10 + $0x54] sm:$0x1]  ;;  %v3842_v38 = vld [vmem:[%s3796_s10 + $0x8] sm:$0xf]  ;;  %v2900_v8 = vcombine.low %v3810_v13, %v3810_v13 }
  0x25   : > { %1065 = vrot.lane.b32.xlu1 %v3804_v10, %s3647_s29  ;;  %1063 = vrot.lane.b32.xlu0 %v3807_v12, %s3647_s29  ;;  %v2892_v20 = vcombine.low %v3817_v18, %v406_v19  ;;  %v935_v26 = vshll.u32 %v3813_v15, 16  ;;  %v3834_v33 = vld [vmem:[%s3796_s10 + $0x10] sm:$0xf]  ;;  %v933_v36 = vshrl.u32 %v3813_v15, 16  ;;  %v390_v37 = vld [vmem:[%s3796_s10 + $0x14] sm:$0x1] }
  0x26   : > { %v984_v21 = vrot.slane %v2893_v17, 1  ;;  %v921_v22 = vshll.u32 %v2893_v17, 16  ;;  %v3825_v25 = vrot.slane %v2894_v16, 1  ;;  %v919_v29 = vshrl.u32 %v2893_v17, 16  ;;  %v388_v43 = vld [vmem:[%s3796_s10 + $0xc] sm:$0x1]  ;;  %3130 = vmatpush3.bf16.msra.mxu0 %v3468_v53 }
  0x27   : > { %v912_v23 = vshrl.u32 %v2892_v20, 16  ;;  %v914_v24 = vshll.u32 %v2892_v20, 16  ;;  %v928_v31 = vshll.u32 %v2894_v16, 16  ;;  %v983_v35 = vrot.slane %v2892_v20, 1  ;;  %v3854_v45 = vld [vmem:[%s3796_s10] sm:$0xf]  ;;  %3131 = vmatprep.subr.bf16.mxu0 %v3472_v58 }
  0x28   : > { %v923_v30 = vrot.slane %v921_v22, 1  ;;  %v926_v40 = vshrl.u32 %v2894_v16, 16  ;;  %v937_v42 = vrot.slane %v935_v26, 1  ;;  %v386_v46 = vld [vmem:[%s3796_s10 + $0x4] sm:$0x1]  ;;  %v3861_v48 = vcombine.low %v3834_v33, %v390_v37  ;;  %s2867_s14 = sshll.u32 %s355_s22, 6 }
  0x29   : > { %993 = vrot.lane.b32.xlu1 %v984_v21, %s3647_s29  ;;  %1044 = vrot.lane.b32.xlu0 %v984_v21, %s3648_s16  ;;  %v916_v28 = vrot.slane %v914_v24, 1  ;;  %v930_v41 = vrot.slane %v928_v31, 1  ;;  %v3864_v49 = vcombine.low %v3842_v38, %v388_v43  ;;  %v3874_v52 = vcombine.low %v3854_v45, %v386_v46  ;;  %v3880_v54 = vld [vmem:[%s3796_s10 + $0x70] sm:$0xf]  ;;  %v414_v55 = vld [vmem:[%s3796_s10 + $0x74] sm:$0x1] }
  0x2a   : > { %v3847_v39 = vor.u32 %v923_v30, %v919_v29  ;;  %v3871_v51 = vor.u32 %v937_v42, %v933_v36  ;;  %v416_v56 = vld [vmem:[%s3796_s10 + $0x7c] sm:$0x1]  ;;  %v3893_v59 = vrot.slane %v3861_v48, 1  ;;  %v3901_v63 = vcombine.low %v3880_v54, %v414_v55  ;;  %v3908_v2 = vld [vmem:[%s3796_s10 + $0x78] sm:$0xf]  ;;  %3132 = vmatpush3.bf16.msra.mxu0 %v3474_v0  ;;  %v3475_v21 = vld [vmem:[%s4973_s1] sm:$0xff]  }
  0x2b   : > { %v917_v32 = vor.u32 %v916_v28, %v912_v23  ;;  %v3869_v50 = vor.u32 %v930_v41, %v926_v40  ;;  %v495_v57 = vshll.u32 %v3864_v49, 16  ;;  %v558_v60 = vrot.slane %v3864_v49, 1  ;;  %v392_v1 = vld [vmem:[%s3796_s10 + $0x1c] sm:$0x1]  ;;  %v3916_v7 = vld [vmem:[%s3796_s10 + $0x80] sm:$0xf] }
  0x2c   : > { %v488_v61 = vshll.u32 %v3874_v52, 16  ;;  %v493_v3 = vshrl.u32 %v3864_v49, 16  ;;  %v486_v5 = vshrl.u32 %v3874_v52, 16  ;;  %v3913_v6 = vcombine.low %v3908_v2, %v416_v56  ;;  %v391_v11 = vld [vmem:[%s3796_s10 + $0x18] sm:$0xf]  ;;  %v3476_v29 = vld [vmem:[%s4973_s1 + $0x100] sm:$0xff]  }
  0x2d   : > { %1046 = vrot.lane.b32.xlu0 %v3825_v25, %s3648_s16  ;;  %967 = vrot.lane.b32.xlu1 %v917_v32, %s3648_s16  ;;  %v497_v4 = vrot.slane %v495_v57, 1  ;;  %v3927_v14 = vrot.slane %v3813_v15, 1  ;;  %v418_v16 = vld [vmem:[%s3796_s10 + $0x84] sm:$0x1]  ;;  %v3931_v17 = vrot.slane %v3901_v63, 1  ;;  %v3940_v22 = vcombine.low %v391_v11, %v392_v1  ;;  %v3480_v41 = vld [vmem:[%s4973_s1 + $0x108] sm:$0xff]  }
  0x2e   : > { %v490_v9 = vrot.slane %v488_v61, 1  ;;  %v3934_v19 = vrot.slane %v3913_v6, 1  ;;  %v420_v20 = vld [vmem:[%s3796_s10 + $0x8c] sm:$0x1]  ;;  %v3943_v23 = vld [vmem:[%s3796_s10 + $0x88] sm:$0xf]  ;;  %v3955_v28 = vcombine.low %v3916_v7, %v418_v16  ;;  %v2882_v31 = vcombine.low %v3834_v33, %v3834_v33  ;;  %3133 = vmatprep.subr.bf16.mxu0 %v3476_v29 }
  0x2f   : > { %v2949_v15 = vcombine.low %v3825_v25, %v3927_v14  ;;  %v3952_v26 = vor.u32 %v497_v4, %v493_v3  ;;  %v3962_v30 = vcombine.low %v3943_v23, %v420_v20  ;;  %v509_v32 = vshll.u32 %v3940_v22, 16  ;;  %v3478_v34 = vld [vmem:[%s4973_s1 + $0xc0] sm:$0xff]   ;;  %v3479_v33 = vld [vmem:[%s4973_s1 + $0x8] sm:$0xff]   ;;  %v3481_v43 = vld [vmem:[%s4973_s1 + $0x50] sm:$0xff]   ;;  %s4894_s26 = scalar_lea.vmem [#allocation2], %s2867_s14  ;;  %s3116_s17 = sshll.u32 %s3633_s9, 5 }
  0x30   : > { %v2952_v24 = vcombine.low %v3931_v17, %v3934_v19  ;;  %v491_v27 = vor.u32 %v490_v9, %v486_v5  ;;  %v502_v36 = vshll.u32 %v3861_v48, 16  ;;  %v3981_v37 = vrot.slane %v3955_v28, 1  ;;  %3134 = vmatpush3.bf16.msra.mxu0 %v3478_v34  ;;  %v3484_v56 = vld [vmem:[%s4973_s1 + $0x58] sm:$0xff]   ;;  %v4017_v58 = vld [vmem:[%s3796_s10 + $0x90] sm:$0xf]  ;;  %v3487_v1 = vld [vmem:[%s4973_s1 + $0x60] sm:$0xff]   ;;  %s2749_s20 = sadd.s32 %s3116_s17, %s3115_s13 }
  0x31   : > { %991 = vrot.lane.b32.xlu0 %v983_v35, %s3647_s29  ;;  %969 = vrot.lane.b32.xlu1 %v3847_v39, %s3648_s16  ;;  %v3977_v35 = vcombine.low %v391_v11, %v391_v11  ;;  %v3987_v40 = vrot.slane %v3962_v30, 1  ;;  %v557_v42 = vrot.slane %v3874_v52, 1  ;;  %v500_v46 = vshrl.u32 %v3861_v48, 16  ;;  %v3483_v48 = vld [vmem:[%s4973_s1 + $0x10] sm:$0xff]   ;;  %v3485_v57 = vld [vmem:[%s4973_s1 + $0x18] sm:$0xff]   ;;  %s3117_s30 = sshll.u32 %s2749_s20, 7 }
  0x32   : > { %3269 = vmatprep.mubr.msk.bf16.mxu1 %vm680_vm0, %v2949_v15  ;;  %3135 = vmatprep.subr.bf16.mxu0 %v3480_v41  ;;  %v507_v52 = vshrl.u32 %v3940_v22, 16  ;;  %v511_v53 = vrot.slane %v509_v32, 1  ;;  %v504_v55 = vrot.slane %v502_v36, 1  ;;  %v422_v61 = vld [vmem:[%s3796_s10 + $0x94] sm:$0x1]  ;;  %v3488_v49 = vld [vmem:[%s4973_s1 + $0x20] sm:$0xff]  }
  0x33   : > { %3270 = vmatmul.mubr.msk.bf16.vlgmr.msra.gmra.mrb[0].mxu1 %vm680_vm0, %v2952_v24  ;;  %v2955_v44 = vcombine.low %v3981_v37, %v3987_v40  ;;  %v4032_v3 = vcombine.low %v4017_v58, %v422_v61  ;;  %v4044_v4 = vld [vmem:[%s3796_s10 + $0x98] sm:$0xf]  ;;  %v424_v5 = vld [vmem:[%s3796_s10 + $0x9c] sm:$0x1]  ;;  %v3490_v16 = vld [vmem:[%s4973_s1 + $0x28] sm:$0xff]   ;;  %v947_v32 = vshrl.u32 %v3913_v6, 16 }
  0x34   : > { %3168 = vmatpush3.bf16.msra.mxu1 %v3475_v21  ;;  %3136 = vmatpush3.bf16.msra.mxu0 %v3482_v47  ;;  %v4024_v62 = vor.u32 %v511_v53, %v507_v52  ;;  %v4026_v0 = vor.u32 %v504_v55, %v500_v46  ;;  %v4051_v9 = vcombine.low %v4044_v4, %v424_v5  ;;  %v3494_v15 = vld [vmem:[%s4973_s1 + $0x70] sm:$0xff]   ;;  %v3497_v29 = vld [vmem:[%s4973_s1 + $0x38] sm:$0xff]   ;;  %v949_v34 = vshll.u32 %v3913_v6, 16  ;;  %v394_v41 = vld [vmem:[%s3796_s10 + $0x24] sm:$0x1]  ;;  %s2752_s9 = sshll.u32 %s4894_s26, 4  ;;  %s4913_s9 = int_to_ptr.vmem [resolvable:$true] %s2752_s9 }
  0x35   : > { %1089 = vrot.lane.b32.xlu0 %v3869_v50, %s3649_s15  ;;  %1091 = vrot.lane.b32.xlu1 %v3871_v51, %s3649_s15  ;;  %v1043_v11 = vrot.slane %v4032_v3, 1  ;;  %v3495_v24 = vld [vmem:[%s4973_s1 + $0x30] sm:$0xff]   ;;  %v940_v36 = vshrl.u32 %v3901_v63, 16  ;;  %v4116_v46 = vrot.slane %v3940_v22, 1  ;;  %v956_v5 = vshll.u32 %v3955_v28, 16 }
  0x36   : > { %3273 = vmatprep.mubr.msk.bf16.mxu1 %vm680_vm0, %v2955_v44  ;;  %v1105_v20 = vrot.slane %v4051_v9, 1 }
  0x38   : > { %v2958_v21 = vcombine.low %v1043_v11, %v1105_v20  ;;  %v954_v20 = vshrl.u32 %v3955_v28, 16 }
  0x39   : > { %620 = vrot.lane.b32.xlu1 %v3893_v59, %s3648_s16  ;;  %618 = vrot.lane.b32.xlu0 %v558_v60, %s3648_s16 }
  0x3b   : > { %3274 = vmatmul.mubr.msk.bf16.gmra.mrb[4].mxu1 %vm680_vm0, %v2958_v21  ;;  %v958_v21 = vrot.slane %v956_v5, 1 }
  0x3d   : > { %1019 = vrot.lane.b32.xlu1 %v3807_v12, %s3649_s15  ;;  %1017 = vrot.lane.b32.xlu0 %v2900_v8, %s3649_s15  ;;  %v3477_v12 = vld [vmem:[%s4973_s1 + $0x48] sm:$0xff]  }
  0x3e   : > { %3169 = vmatprep.subr.bf16.mxu1 %v3477_v12  ;;  %v3489_v8 = vld [vmem:[%s4973_s1 + $0x68] sm:$0xff]   ;;  %v4081_v12 = vcombine.low %v3908_v2, %v3908_v2  ;;  %v4094_v2 = vld [vmem:[%s3796_s10 + $0x20] sm:$0xf] }
  0x3f   : > { %3170 = vmatpush3.bf16.msra.mxu1 %v3479_v33  ;;  %v942_v33 = vshll.u32 %v3901_v63, 16  ;;  %v2884_v52 = vcombine.low %v4094_v2, %v4094_v2 }
  0x40   : > { %3171 = vmatprep.subr.bf16.mxu1 %v3481_v43  ;;  %v2877_v43 = vcombine.low %v4094_v2, %v394_v41 }
  0x41   : > { %543 = vrot.lane.b32.xlu1 %v3952_v26, %s3648_s16  ;;  %541 = vrot.lane.b32.xlu0 %v491_v27, %s3648_s16  ;;  %v3496_v27 = vld [vmem:[%s4973_s1 + $0x78] sm:$0xff]  }
  0x42   : > { %v4113_v44 = vrot.slane %v2877_v43, 1  ;;  %v516_v55 = vshll.u32 %v2877_v43, 16 }
  0x43   : > { %3172 = vmatpush3.bf16.msra.mxu1 %v3483_v48 }
  0x44   : > { %3173 = vmatprep.subr.bf16.mxu1 %v3484_v56  ;;  %v514_v56 = vshrl.u32 %v2877_v43, 16 }
  0x45   : > { %639 = vrot.lane.b32.xlu1 %v3977_v35, %s3647_s29  ;;  %637 = vrot.lane.b32.xlu0 %v2882_v31, %s3647_s29 }
  0x47   : > { %3174 = vmatpush3.bf16.msra.mxu1 %v3485_v57  ;;  %v518_v57 = vrot.slane %v516_v55, 1 }
  0x48   : > { %3175 = vmatprep.subr.bf16.mxu1 %v3487_v1 }
  0x49   : > { %567 = vrot.lane.b32.xlu1 %v558_v60, %s3647_s29  ;;  %565 = vrot.lane.b32.xlu0 %v557_v42, %s3647_s29  ;;  %v2881_v60 = vcombine.low %v3842_v38, %v3842_v38  ;;  %v944_v42 = vrot.slane %v942_v33, 1  ;;  %v4149_v1 = vor.u32 %v518_v57, %v514_v56 }
  0x4b   : > { %3176 = vmatpush3.bf16.msra.mxu1 %v3488_v49  ;;  %v4106_v6 = vor.u32 %v944_v42, %v940_v36  ;;  %v4168_v49 = vcombine.low %v3943_v23, %v3943_v23  ;;  %v4180_v23 = vld [vmem:[%s3796_s10 + $0x30] sm:$0xf] }
  0x4c   : > { %3177 = vmatprep.subr.bf16.mxu1 %v3489_v8  ;;  %v961_v8 = vshrl.u32 %v3962_v30, 16  ;;  %v2886_v42 = vcombine.low %v4180_v23, %v4180_v23 }
  0x4d   : > { %665 = vrot.lane.b32.xlu1 %v4024_v62, %s3649_s15  ;;  %663 = vrot.lane.b32.xlu0 %v4026_v0, %s3649_s15 }
  0x4f   : > { %3178 = vmatpush3.bf16.msra.mxu1 %v3490_v16 }
  0x50   : > { %3179 = vmatprep.subr.bf16.mxu1 %v3494_v15  ;;  %v398_v15 = vld [vmem:[%s3796_s10 + $0x34] sm:$0x1] }
  0x51   : > { %593 = vrot.lane.b32.xlu1 %v2882_v31, %s3649_s15  ;;  %591 = vrot.lane.b32.xlu0 %v2881_v60, %s3649_s15  ;;  %v2903_v31 = vcombine.low %v3880_v54, %v3880_v54  ;;  %v951_v54 = vrot.slane %v949_v34, 1  ;;  %v963_v60 = vshll.u32 %v3962_v30, 16  ;;  %v2879_v30 = vcombine.low %v4180_v23, %v398_v15  ;;  %v4206_v34 = vld [vmem:[%s3796_s10 + $0x38] sm:$0xf] }
  0x53   : > { %3180 = vmatpush3.bf16.msra.mxu1 %v3495_v24  ;;  %v4104_v63 = vor.u32 %v951_v54, %v947_v32  ;;  %v965_v16 = vrot.slane %v963_v60, 1  ;;  %v4189_v24 = vor.u32 %v958_v21, %v954_v20  ;;  %v4196_v28 = vrot.slane %v2879_v30, 1 }
  0x54   : > { %3181 = vmatprep.subr.bf16.mxu1 %v3496_v27  ;;  %v4220_v54 = vcombine.low %v4206_v34, %v4206_v34  ;;  %v530_v43 = vshll.u32 %v2879_v30, 16 }
  0x55   : > { %1050 = vrot.lane.b32.xlu1 %v3931_v17, %s3648_s16  ;;  %1048 = vrot.lane.b32.xlu0 %v3927_v14, %s3648_s16 }
  0x56   : > { %v532_v56 = vrot.slane %v530_v43, 1 }
  0x57   : > { %3182 = vmatpush3.bf16.msra.mxu1 %v3497_v29 }
  0x59   : > { %973 = vrot.lane.b32.xlu1 %v3871_v51, %s3648_s16  ;;  %971 = vrot.lane.b32.xlu0 %v3869_v50, %s3648_s16 }
  0x5d   : > { %1069 = vrot.lane.b32.xlu1 %v4081_v12, %s3647_s29  ;;  %1067 = vrot.lane.b32.xlu0 %v2903_v31, %s3647_s29 }
  0x61   : > { %997 = vrot.lane.b32.xlu1 %v3927_v14, %s3647_s29  ;;  %995 = vrot.lane.b32.xlu0 %v3825_v25, %s3647_s29  ;;  %v396_v25 = vld [vmem:[%s3796_s10 + $0x2c] sm:$0x1]  ;;  %v4124_v14 = vld [vmem:[%s3796_s10 + $0x28] sm:$0xf] }
  0x62   : > { %v2878_v47 = vcombine.low %v4124_v14, %v396_v25  ;;  %v4136_v22 = vcombine.low %v4124_v14, %v4124_v14 }
  0x64   : > { %v523_v53 = vshll.u32 %v2878_v47, 16  ;;  %v4198_v27 = vrot.slane %v2878_v47, 1 }
  0x65   : > { %1095 = vrot.lane.b32.xlu1 %v4104_v63, %s3649_s15  ;;  %1093 = vrot.lane.b32.xlu0 %v4106_v6, %s3649_s15 }
  0x66   : > { %v525_v48 = vrot.slane %v523_v53, 1 }
  0x69   : > { %624 = vrot.lane.b32.xlu1 %v4113_v44, %s3648_s16  ;;  %622 = vrot.lane.b32.xlu0 %v4116_v46, %s3648_s16 }
  0x6d   : > { %1023 = vrot.lane.b32.xlu1 %v2903_v31, %s3649_s15  ;;  %1021 = vrot.lane.b32.xlu0 %v3804_v10, %s3649_s15  ;;  %v521_v10 = vshrl.u32 %v2878_v47, 16 }
  0x6f   : > { %v4147_v61 = vor.u32 %v525_v48, %v521_v10  ;;  %v528_v48 = vshrl.u32 %v2879_v30, 16 }
  0x71   : > { %547 = vrot.lane.b32.xlu1 %v4024_v62, %s3648_s16  ;;  %545 = vrot.lane.b32.xlu0 %v4026_v0, %s3648_s16  ;;  %v4243_v20 = vor.u32 %v532_v56, %v528_v48  ;;  %v1083_v48 = vshrl.u32 %v4051_v9, 16 }
  0x75   : > { %643 = vrot.lane.b32.xlu1 %v4136_v22, %s3647_s29  ;;  %641 = vrot.lane.b32.xlu0 %v2884_v52, %s3647_s29 }
  0x79   : > { %571 = vrot.lane.b32.xlu1 %v4116_v46, %s3647_s29  ;;  %569 = vrot.lane.b32.xlu0 %v3893_v59, %s3647_s29 }
  0x7d   : > { %669 = vrot.lane.b32.xlu1 %v4147_v61, %s3649_s15  ;;  %667 = vrot.lane.b32.xlu0 %v4149_v1, %s3649_s15 }
  0x81   : > { %597 = vrot.lane.b32.xlu1 %v2884_v52, %s3649_s15  ;;  %595 = vrot.lane.b32.xlu0 %v3977_v35, %s3649_s15  ;;  %v2905_v35 = vcombine.low %v3916_v7, %v3916_v7  ;;  %v4187_v7 = vor.u32 %v965_v16, %v961_v8 }
  0x85   : > { %1054 = vrot.lane.b32.xlu1 %v3981_v37, %s3648_s16  ;;  %1052 = vrot.lane.b32.xlu0 %v3934_v19, %s3648_s16 }
  0x89   : > { %977 = vrot.lane.b32.xlu1 %v4104_v63, %s3648_s16  ;;  %975 = vrot.lane.b32.xlu0 %v4106_v6, %s3648_s16 }
  0x8d   : > { %1073 = vrot.lane.b32.xlu1 %v4168_v49, %s3647_s29  ;;  %1071 = vrot.lane.b32.xlu0 %v2905_v35, %s3647_s29 }
  0x91   : > { %1001 = vrot.lane.b32.xlu1 %v3934_v19, %s3647_s29  ;;  %999 = vrot.lane.b32.xlu0 %v3931_v17, %s3647_s29  ;;  %v400_v17 = vld [vmem:[%s3796_s10 + $0x3c] sm:$0x1] }
  0x92   : > { %v4212_v36 = vcombine.low %v4206_v34, %v400_v17 }
  0x94   : > { %v535_v55 = vshrl.u32 %v4212_v36, 16 }
  0x95   : > { %1099 = vrot.lane.b32.xlu1 %v4187_v7, %s3649_s15  ;;  %1097 = vrot.lane.b32.xlu0 %v4189_v24, %s3649_s15 }
  0x97   : > { %v1066_v19 = vpop.permute.xlu1 %1065  ;;  %v1064_v29 = vpop.permute.xlu0 %1063 }
  0x99   : > { %628 = vrot.lane.b32.xlu1 %v4196_v28, %s3648_s16  ;;  %626 = vrot.lane.b32.xlu0 %v4198_v27, %s3648_s16 }
  0x9b   : > { %v994_v31 = vpop.permute.xlu1 %993  ;;  %v1045_v32 = vpop.permute.xlu0 %1044 }
  0x9c   : > { %v1164_v52 = vsel %vm680_vm0, %v3847_v39, %v1045_v32 }
  0x9d   : > { %1027 = vrot.lane.b32.xlu1 %v2905_v35, %s3649_s15  ;;  %1025 = vrot.lane.b32.xlu0 %v4081_v12, %s3649_s15  ;;  %v537_v12 = vshll.u32 %v4212_v36, 16  ;;  %v1187_v60 = vsel %vm705_vm1, %v1164_v52, %v1064_v29 }
  0x9f   : > { %v1047_v33 = vpop.permute.xlu0 %1046  ;;  %v968_v41 = vpop.permute.xlu1 %967  ;;  %v539_v10 = vrot.slane %v537_v12, 1 }
  0xa0   : > { %v1167_v53 = vsel %vm680_vm0, %v3869_v50, %v1047_v33 }
  0xa1   : > { %551 = vrot.lane.b32.xlu1 %v4147_v61, %s3648_s16  ;;  %549 = vrot.lane.b32.xlu0 %v4149_v1, %s3648_s16  ;;  %v1189_v39 = vsel %vm705_vm1, %v1167_v53, %v1066_v19  ;;  %v4241_v16 = vor.u32 %v539_v10, %v535_v55  ;;  %v1108_v19 = vsel %vm680_vm0, %v3817_v18, %v968_v41  ;;  %v1039_v41 = vshll.u32 %v4032_v3, 16 }
  0xa2   : > { %v1037_v55 = vshrl.u32 %v4032_v3, 16 }
  0xa3   : > { %v992_v25 = vpop.permute.xlu0 %991  ;;  %v970_v47 = vpop.permute.xlu1 %969  ;;  %v1041_v10 = vrot.slane %v1039_v41, 1  ;;  %v3522_v41 = vld [vmem:[%s4973_s1 + $0x120] sm:$0xff]  }
  0xa4   : > { %v1111_v30 = vsel %vm680_vm0, %v3810_v13, %v970_v47  ;;  %v1131_v29 = vsel %vm705_vm1, %v1108_v19, %v992_v25 }
  0xa5   : > { %647 = vrot.lane.b32.xlu1 %v4220_v54, %s3647_s29  ;;  %645 = vrot.lane.b32.xlu0 %v2886_v42, %s3647_s29  ;;  %v1133_v17 = vsel %vm705_vm1, %v1111_v30, %v994_v31 }
  0xa7   : > { %v1090_v57 = vpop.permute.xlu0 %1089  ;;  %v1092_v35 = vpop.permute.xlu1 %1091 }
  0xa8   : > { %v1203_v50 = vsel %vm722_vm2, %v1187_v60, %v1090_v57  ;;  %v1205_v5 = vsel %vm722_vm2, %v1189_v39, %v1092_v35  ;;  %v401_v57 = vld [vmem:[%s3796_s10 + $0x40] sm:$0xf]  ;;  %v402_v35 = vld [vmem:[%s3796_s10 + $0x44] sm:$0x1] }
  0xa9   : > { %575 = vrot.lane.b32.xlu1 %v4198_v27, %s3647_s29  ;;  %573 = vrot.lane.b32.xlu0 %v4113_v44, %s3647_s29  ;;  %v2948_v8 = vcombine.low %v1203_v50, %v1205_v5 }
  0xab   : > { %1467 = vmatprep.mubr.bf16.mxu0 %v2948_v8  ;;  %v621_v21 = vpop.permute.xlu1 %620  ;;  %v619_v15 = vpop.permute.xlu0 %618 }
  0xad   : > { %673 = vrot.lane.b32.xlu1 %v4241_v16, %s3649_s15  ;;  %671 = vrot.lane.b32.xlu0 %v4243_v20, %s3649_s15 }
  0xaf   : > { %v1020_v32 = vpop.permute.xlu1 %1019  ;;  %v1018_v33 = vpop.permute.xlu0 %1017 }
  0xb0   : > { %v1149_v12 = vsel %vm722_vm2, %v1133_v17, %v1020_v32  ;;  %v1147_v43 = vsel %vm722_vm2, %v1131_v29, %v1018_v33 }
  0xb1   : > { %v2947_v13 = vcombine.low %v1147_v43, %v1149_v12  ;;  %601 = vrot.lane.b32.xlu1 %v2886_v42, %s3649_s15  ;;  %599 = vrot.lane.b32.xlu0 %v4136_v22, %s3649_s15  ;;  %v2909_v22 = vcombine.low %v4044_v4, %v4044_v4  ;;  %v1085_v42 = vshll.u32 %v4051_v9, 16  ;;  %v744_v4 = vsel %vm680_vm0, %v4026_v0, %v621_v21 }
  0xb2   : > { %v4289_v9 = vor.u32 %v1041_v10, %v1037_v55  ;;  %v4295_v0 = vcombine.low %v401_v57, %v402_v35  ;;  %v3523_v55 = vld [vmem:[%s4973_s1 + $0x168] sm:$0xff]  }
  0xb3   : > { %1468 = vmatmul.mubr.bf16.vlgmr.msra.gmra.mrb[0].mxu0 %v2947_v13  ;;  %v544_v47 = vpop.permute.xlu1 %543  ;;  %v542_v52 = vpop.permute.xlu0 %541  ;;  %v1087_v56 = vrot.slane %v1085_v42, 1  ;;  %v404_v13 = vld [vmem:[%s3796_s10 + $0x4c] sm:$0x1] }
  0xb4   : > { %v686_v21 = vsel %vm680_vm0, %v3842_v38, %v544_v47  ;;  %v617_v38 = vrot.slane %v4295_v0, 1  ;;  %v403_v47 = vld [vmem:[%s3796_s10 + $0x48] sm:$0xf]  ;;  %v611_v35 = vshrl.u32 %v4295_v0, 16 }
  0xb5   : > { %1058 = vrot.lane.b32.xlu1 %v1043_v11, %s3648_s16  ;;  %1056 = vrot.lane.b32.xlu0 %v3987_v40, %s3648_s16  ;;  %v2907_v11 = vcombine.low %v4017_v58, %v4017_v58  ;;  %v741_v58 = vsel %vm680_vm0, %v3952_v26, %v619_v15  ;;  %v1088_v26 = vor.u32 %v1087_v56, %v1083_v48  ;;  %v3524_v10 = vld [vmem:[%s4973_s1 + $0x128] sm:$0xff]  }
  0xb6   : > { %v683_v15 = vsel %vm680_vm0, %v3854_v45, %v542_v52  ;;  %v4310_v45 = vrot.slane %v4212_v36, 1  ;;  %v3521_v36 = vld [vmem:[%s4973_s1 + $0x160] sm:$0xff]  }
  0xb7   : > { %v640_v18 = vpop.permute.xlu1 %639  ;;  %v638_v31 = vpop.permute.xlu0 %637  ;;  %3213 = vmatprep.subr.bf16.mxu0 %v3521_v36  ;;  %v3529_v36 = vld [vmem:[%s4973_s1 + $0x88] sm:$0xff]  }
  0xb8   : > { %v766_v60 = vsel %vm705_vm1, %v744_v4, %v640_v18  ;;  %v764_v3 = vsel %vm705_vm1, %v741_v58, %v638_v31  ;;  %v4323_v31 = vcombine.low %v403_v47, %v404_v13  ;;  %3214 = vmatpush3.bf16.msra.mxu0 %v3522_v41  ;;  %v3530_v41 = vld [vmem:[%s4973_s1 + $0x138] sm:$0xff]  }
  0xb9   : > { %981 = vrot.lane.b32.xlu1 %v4187_v7, %s3648_s16  ;;  %979 = vrot.lane.b32.xlu0 %v4189_v24, %s3648_s16 }
  0xba   : > { %v657_v4 = vshrl.u32 %v4323_v31, 16  ;;  %3215 = vmatprep.subr.bf16.mxu0 %v3523_v55 }
  0xbb   : > { %v568_v25 = vpop.permute.xlu1 %567  ;;  %v566_v53 = vpop.permute.xlu0 %565 }
  0xbc   : > { %v709_v19 = vsel %vm705_vm1, %v686_v21, %v568_v25  ;;  %v707_v29 = vsel %vm705_vm1, %v683_v15, %v566_v53  ;;  %v659_v25 = vshll.u32 %v4323_v31, 16  ;;  %v613_v53 = vshll.u32 %v4295_v0, 16  ;;  %3216 = vmatpush3.bf16.msra.mxu0 %v3524_v10  ;;  %v3527_v21 = vld [vmem:[%s4973_s1 + $0x130] sm:$0xff]   ;;  %v3543_v10 = vld [vmem:[%s3796_s10 + $0x68] sm:$0xf] }
  0xbd   : > { %1077 = vrot.lane.b32.xlu1 %v2909_v22, %s3647_s29  ;;  %1075 = vrot.lane.b32.xlu0 %v2907_v11, %s3647_s29 }
  0xbe   : > { %v661_v58 = vrot.slane %v659_v25, 1 }
  0xbf   : > { %v666_v39 = vpop.permute.xlu1 %665  ;;  %v664_v50 = vpop.permute.xlu0 %663 }
  0xc0   : > { %v782_v5 = vsel %vm722_vm2, %v766_v60, %v666_v39  ;;  %v780_v8 = vsel %vm722_vm2, %v764_v3, %v664_v50  ;;  %v4351_v60 = vld [vmem:[%s3796_s10 + $0xa8] sm:$0xf]  ;;  %v428_v3 = vld [vmem:[%s3796_s10 + $0xac] sm:$0x1]  ;;  %v3525_v39 = vld [vmem:[%s4973_s1 + $0x80] sm:$0xff]  }
  0xc1   : > { %v2982_v30 = vcombine.low %v780_v8, %v782_v5  ;;  %1005 = vrot.lane.b32.xlu1 %v3987_v40, %s3647_s29  ;;  %1003 = vrot.lane.b32.xlu0 %v3981_v37, %s3647_s29  ;;  %v3526_v50 = vld [vmem:[%s4973_s1 + $0x170] sm:$0xff]   ;;  %v4392_v13 = vcombine.low %v4351_v60, %v428_v3 }
  0xc2   : > { %3277 = vmatprep.subr.bf16.mxu1 %v3525_v39  ;;  %3217 = vmatprep.subr.bf16.mxu0 %v3526_v50 }
  0xc3   : > { %v594_v17 = vpop.permute.xlu1 %593  ;;  %1737 = vmatprep.mubr.bf16.mxu1 %v2982_v30  ;;  %v592_v40 = vpop.permute.xlu0 %591  ;;  %v4368_v30 = vld [vmem:[%s3796_s10 + $0xa0] sm:$0xf]  ;;  %3218 = vmatpush3.bf16.msra.mxu0 %v3527_v21  ;;  %v1883_v21 = vshrl.u32 %v4392_v13, 16 }
  0xc4   : > { %v726_v37 = vsel %vm722_vm2, %v709_v19, %v594_v17  ;;  %v724_v32 = vsel %vm722_vm2, %v707_v29, %v592_v40  ;;  %v662_v40 = vor.u32 %v661_v58, %v657_v4  ;;  %v3544_v58 = vld [vmem:[%s3796_s10 + $0x60] sm:$0xf] }
  0xc5   : > { %v2981_v33 = vcombine.low %v724_v32, %v726_v37  ;;  %1103 = vrot.lane.b32.xlu1 %v1088_v26, %s3649_s15  ;;  %1101 = vrot.lane.b32.xlu0 %v4289_v9, %s3649_s15  ;;  %v426_v26 = vld [vmem:[%s3796_s10 + $0xa4] sm:$0x1]  ;;  %v4381_v32 = vld [vmem:[%s3796_s10 + $0xb0] sm:$0xf] }
  0xc7   : > { %v1051_v12 = vpop.permute.xlu1 %1050  ;;  %1738 = vmatmul.mubr.bf16.vlgmr.msra.gmra.mrb[8].mxu1 %v2981_v33  ;;  %v1049_v43 = vpop.permute.xlu0 %1048  ;;  %v430_v33 = vld [vmem:[%s3796_s10 + $0xb4] sm:$0x1] }
  0xc8   : > { %v1173_v5 = vsel %vm680_vm0, %v4106_v6, %v1051_v12  ;;  %v1170_v8 = vsel %vm680_vm0, %v3871_v51, %v1049_v43  ;;  %3278 = vmatpush3.bf16.msra.mxu1 %v3525_v39  ;;  %v3528_v12 = vld [vmem:[%s4973_s1 + $0x178] sm:$0xff]   ;;  %v4408_v25 = vcombine.low %v4381_v32, %v430_v33 }
  0xc9   : > { %632 = vrot.lane.b32.xlu1 %v617_v38, %s3648_s16  ;;  %630 = vrot.lane.b32.xlu0 %v4310_v45, %s3648_s16  ;;  %v4449_v33 = vld [vmem:[%s3796_s10 + $0xb8] sm:$0xf] }
  0xca   : > { %3219 = vmatprep.subr.bf16.mxu0 %v3528_v12  ;;  %3279 = vmatprep.subr.bf16.mxu1 %v3529_v36 }
  0xcb   : > { %v4319_v52 = vpop.permute.xlu1 %973  ;;  %v4321_v18 = vpop.permute.xlu0 %971  ;;  %3220 = vmatpush3.bf16.msra.mxu0 %v3530_v41 }
  0xcc   : > { %3280 = vmatpush3.bf16.msra.mxu1 %v3529_v36  ;;  %v1117_v4 = vsel %vm680_vm0, %v3543_v10, %v4319_v52  ;;  %v3537_v36 = vld [vmem:[%s4973_s1 + $0x150] sm:$0xff]  }
  0xcd   : > { %1031 = vrot.lane.b32.xlu1 %v2907_v11, %s3649_s15  ;;  %1029 = vrot.lane.b32.xlu0 %v4168_v49, %s3649_s15  ;;  %v2890_v49 = vcombine.low %v403_v47, %v403_v47  ;;  %v4340_v11 = vcombine.low %v401_v57, %v401_v57  ;;  %v615_v57 = vrot.slane %v613_v53, 1  ;;  %v4395_v47 = vcombine.low %v4368_v30, %v426_v26  ;;  %v3531_v53 = vld [vmem:[%s4973_s1 + $0x180] sm:$0xff]  }
  0xce   : > { %3221 = vmatprep.subr.bf16.mxu0 %v3531_v53 }
  0xcf   : > { %v1070_v22 = vpop.permute.xlu1 %1069  ;;  %v1068_v42 = vpop.permute.xlu0 %1067  ;;  %v4378_v37 = vor.u32 %v615_v57, %v611_v35  ;;  %v1878_v55 = vshll.u32 %v4395_v47, 16  ;;  %v1114_v35 = vsel %vm680_vm0, %v3544_v58, %v4321_v18  ;;  %v3532_v57 = vld [vmem:[%s4973_s1 + $0x140] sm:$0xff]   ;;  %v1948_v18 = vrot.slane %v4392_v13, 1  ;;  %v3538_v58 = vld [vmem:[%s4973_s1 + $0x198] sm:$0xff]  }
  0xd0   : > { %v1193_v15 = vsel %vm705_vm1, %v1173_v5, %v1070_v22  ;;  %v1191_v19 = vsel %vm705_vm1, %v1170_v8, %v1068_v42  ;;  %v4430_v8 = vrot.slane %v4408_v25, 1  ;;  %3222 = vmatpush3.bf16.msra.mxu0 %v3532_v57  ;;  %v3540_v57 = vld [vmem:[%s4973_s1 + $0x158] sm:$0xff]  }
  0xd1   : > { %555 = vrot.lane.b32.xlu1 %v4241_v16, %s3648_s16  ;;  %553 = vrot.lane.b32.xlu0 %v4243_v20, %s3648_s16 }
  0xd3   : > { %v998_v48 = vpop.permute.xlu1 %997  ;;  %v996_v56 = vpop.permute.xlu0 %995 }
  0xd4   : > { %v1137_v3 = vsel %vm705_vm1, %v1117_v4, %v998_v48  ;;  %v1135_v39 = vsel %vm705_vm1, %v1114_v35, %v996_v56  ;;  %v3533_v48 = vld [vmem:[%s4973_s1 + $0x188] sm:$0xff]   ;;  %v1892_v4 = vshll.u32 %v4408_v25, 16 }
  0xd5   : > { %651 = vrot.lane.b32.xlu1 %v2890_v49, %s3647_s29  ;;  %649 = vrot.lane.b32.xlu0 %v4340_v11, %s3647_s29  ;;  %v1885_v49 = vshll.u32 %v4392_v13, 16  ;;  %v4463_v13 = vld [vmem:[%s4973_s1 + $0x1a0] sm:$0xff]  }
  0xd6   : > { %3223 = vmatprep.subr.bf16.mxu0 %v3533_v48  ;;  %3289 = vmatprep.subr.bf16.mxu1 %v4463_v13  ;;  %v1894_v48 = vrot.slane %v1892_v4, 1 }
  0xd7   : > { %v1096_v29 = vpop.permute.xlu1 %1095  ;;  %v1094_v17 = vpop.permute.xlu0 %1093 }
  0xd8   : > { %v1209_v6 = vsel %vm722_vm2, %v1193_v15, %v1096_v29  ;;  %v1207_v51 = vsel %vm722_vm2, %v1191_v19, %v1094_v17  ;;  %v1887_v15 = vrot.slane %v1885_v49, 1  ;;  %v1876_v19 = vshrl.u32 %v4395_v47, 16  ;;  %v432_v17 = vld [vmem:[%s3796_s10 + $0xbc] sm:$0x1] }
  0xd9   : > { %v2951_v43 = vcombine.low %v1207_v51, %v1209_v6  ;;  %579 = vrot.lane.b32.xlu1 %v4310_v45, %s3647_s29  ;;  %577 = vrot.lane.b32.xlu0 %v4196_v28, %s3647_s29  ;;  %v1880_v29 = vrot.slane %v1878_v55, 1  ;;  %v4474_v49 = vcombine.low %v4449_v33, %v4449_v33  ;;  %v3024_v55 = vcombine.low %v4381_v32, %v4381_v32 }
  0xdb   : > { %v4403_v22 = vpop.permute.xlu1 %624  ;;  %1475 = vmatprep.mubr.bf16.mxu0 %v2951_v43  ;;  %v4405_v42 = vpop.permute.xlu0 %622  ;;  %v1881_v12 = vor.u32 %v1880_v29, %v1876_v19  ;;  %v3018_v43 = vcombine.low %v4449_v33, %v432_v17 }
  0xdd   : > { %677 = vrot.lane.b32.xlu1 %v662_v40, %s3649_s15  ;;  %675 = vrot.lane.b32.xlu0 %v4378_v37, %s3649_s15  ;;  %v3534_v40 = vld [vmem:[%s4973_s1 + $0x148] sm:$0xff]   ;;  %v1899_v10 = vshll.u32 %v3018_v43, 16  ;;  %v4482_v35 = vrot.slane %v3018_v43, 1 }
  0xde   : > { %3224 = vmatpush3.bf16.msra.mxu0 %v3534_v40 }
  0xdf   : > { %v1024_v50 = vpop.permute.xlu1 %1023  ;;  %v1022_v5 = vpop.permute.xlu0 %1021 }
  0xe0   : > { %v1153_v52 = vsel %vm722_vm2, %v1137_v3, %v1024_v50  ;;  %v1151_v26 = vsel %vm722_vm2, %v1135_v39, %v1022_v5  ;;  %v1947_v50 = vrot.slane %v4395_v47, 1  ;;  %v750_v47 = vsel %vm680_vm0, %v4149_v1, %v4403_v22  ;;  %v3545_v22 = vld [vmem:[%s3796_s10 + $0x18] sm:$0xf] }
  0xe1   : > { %v2950_v56 = vcombine.low %v1151_v26, %v1153_v52  ;;  %605 = vrot.lane.b32.xlu1 %v4340_v11, %s3649_s15  ;;  %603 = vrot.lane.b32.xlu0 %v4220_v54, %s3649_s15  ;;  %v3535_v54 = vld [vmem:[%s4973_s1 + $0x190] sm:$0xff]   ;;  %v4457_v11 = vor.u32 %v1887_v15, %v1883_v21  ;;  %v1897_v52 = vshrl.u32 %v3018_v43, 16  ;;  %v1901_v26 = vrot.slane %v1899_v10, 1 }
  0xe2   : > { %3225 = vmatprep.subr.bf16.mxu0 %v3535_v54  ;;  %v1890_v21 = vshrl.u32 %v4408_v25, 16 }
  0xe3   : > { %v548_v6 = vpop.permute.xlu1 %547  ;;  %1476 = vmatmul.mubr.bf16.gmra.mrb[4].mxu0 %v2950_v56  ;;  %v546_v51 = vpop.permute.xlu0 %545  ;;  %v747_v56 = vsel %vm680_vm0, %v4024_v62, %v4405_v42  ;;  %v4506_v1 = vor.u32 %v1901_v26, %v1897_v52  ;;  %v436_v26 = vld [vmem:[%s3796_s10 + $0xcc] sm:$0x1] }
  0xe4   : > { %3226 = vmatpush3.bf16.msra.mxu0 %v3537_v36  ;;  %v4508_v62 = vor.u32 %v1894_v48, %v1890_v21  ;;  %v692_v42 = vsel %vm680_vm0, %v3545_v22, %v548_v6  ;;  %v4515_v36 = vld [vmem:[%s3796_s10 + $0xc0] sm:$0xf] }
  0xe5   : > { %2010 = vrot.lane.b32.xlu1 %v4430_v8, %s3648_s16  ;;  %2008 = vrot.lane.b32.xlu0 %v1948_v18, %s3648_s16 }
  0xe6   : > { %3227 = vmatprep.subr.bf16.mxu0 %v3538_v58 }
  0xe7   : > { %v644_v41 = vpop.permute.xlu1 %643  ;;  %v642_v53 = vpop.permute.xlu0 %641 }
  0xe8   : > { %3228 = vmatpush3.bf16.msra.mxu0 %v3540_v57  ;;  %v770_v15 = vsel %vm705_vm1, %v750_v47, %v644_v41  ;;  %v768_v19 = vsel %vm705_vm1, %v747_v56, %v642_v53  ;;  %v434_v41 = vld [vmem:[%s3796_s10 + $0xc4] sm:$0x1]  ;;  %v4535_v47 = vld [vmem:[%s3796_s10 + $0xc8] sm:$0xf] }
  0xe9   : > { %1933 = vrot.lane.b32.xlu1 %v4457_v11, %s3648_s16  ;;  %1931 = vrot.lane.b32.xlu0 %v1881_v12, %s3648_s16  ;;  %v3546_v12 = vld [vmem:[%s3796_s10 + $0x10] sm:$0xf]  ;;  %v3020_v56 = vcombine.low %v4535_v47, %v436_v26 }
  0xea   : > { %v689_v43 = vsel %vm680_vm0, %v3546_v12, %v546_v51  ;;  %v3023_v51 = vcombine.low %v4351_v60, %v4351_v60 }
  0xeb   : > { %v572_v3 = vpop.permute.xlu1 %571  ;;  %v570_v39 = vpop.permute.xlu0 %569  ;;  %v1911_v22 = vshrl.u32 %v3020_v56, 16 }
  0xec   : > { %v713_v53 = vsel %vm705_vm1, %v692_v42, %v572_v3  ;;  %v711_v10 = vsel %vm705_vm1, %v689_v43, %v570_v39  ;;  %v3019_v3 = vcombine.low %v4515_v36, %v434_v41 }
  0xed   : > { %2029 = vrot.lane.b32.xlu1 %v4474_v49, %s3647_s29  ;;  %2027 = vrot.lane.b32.xlu0 %v3024_v55, %s3647_s29 }
  0xee   : > { %v4531_v52 = vrot.slane %v3019_v3, 1  ;;  %v1904_v12 = vshrl.u32 %v3019_v3, 16 }
  0xef   : > { %v670_v29 = vpop.permute.xlu1 %669  ;;  %v668_v17 = vpop.permute.xlu0 %667 }
  0xf0   : > { %v786_v25 = vsel %vm722_vm2, %v770_v15, %v670_v29  ;;  %v784_v40 = vsel %vm722_vm2, %v768_v19, %v668_v17  ;;  %v3026_v29 = vcombine.low %v4515_v36, %v4515_v36  ;;  %v1913_v17 = vshll.u32 %v3020_v56, 16 }
  0xf1   : > { %v2985_v54 = vcombine.low %v784_v40, %v786_v25  ;;  %1957 = vrot.lane.b32.xlu1 %v1948_v18, %s3647_s29  ;;  %1955 = vrot.lane.b32.xlu0 %v1947_v50, %s3647_s29  ;;  %v1906_v25 = vshll.u32 %v3019_v3, 16  ;;  %v4572_v3 = vld [vmem:[%s3796_s10 + $0xd0] sm:$0xf] }
  0xf2   : > { %v1915_v42 = vrot.slane %v1913_v17, 1 }
  0xf3   : > { %v598_v18 = vpop.permute.xlu1 %597  ;;  %1745 = vmatprep.mubr.bf16.mxu1 %v2985_v54  ;;  %v596_v4 = vpop.permute.xlu0 %595  ;;  %v1908_v43 = vrot.slane %v1906_v25, 1  ;;  %v3548_v25 = vld [vmem:[%s3796_s10 + $0x70] sm:$0xf] }
  0xf4   : > { %v730_v58 = vsel %vm722_vm2, %v713_v53, %v598_v18  ;;  %v728_v57 = vsel %vm722_vm2, %v711_v10, %v596_v4 }
  0xf5   : > { %v2984_v6 = vcombine.low %v728_v57, %v730_v58  ;;  %2055 = vrot.lane.b32.xlu1 %v4506_v1, %s3649_s15  ;;  %2053 = vrot.lane.b32.xlu0 %v4508_v62, %s3649_s15 }
  0xf7   : > { %v1055_v39 = vpop.permute.xlu1 %1054  ;;  %1746 = vmatmul.mubr.bf16.gmra.mrb[12].mxu1 %v2984_v6  ;;  %v1053_v50 = vpop.permute.xlu0 %1052 }
  0xf8   : > { %v1179_v41 = vsel %vm680_vm0, %v4189_v24, %v1055_v39  ;;  %v1176_v53 = vsel %vm680_vm0, %v4104_v63, %v1053_v50  ;;  %v4567_v63 = vor.u32 %v1915_v42, %v1911_v22  ;;  %v4569_v24 = vor.u32 %v1908_v43, %v1904_v12  ;;  %v438_v39 = vld [vmem:[%s3796_s10 + $0xd4] sm:$0x1] }
  0xf9   : > { %1983 = vrot.lane.b32.xlu1 %v3024_v55, %s3649_s15  ;;  %1981 = vrot.lane.b32.xlu0 %v3023_v51, %s3649_s15  ;;  %v4548_v55 = vcombine.low %v4535_v47, %v4535_v47 }
  0xfb   : > { %v978_v21 = vpop.permute.xlu1 %977  ;;  %v976_v48 = vpop.permute.xlu0 %975 }
  0xfc   : > { %v1120_v22 = vsel %vm680_vm0, %v3548_v25, %v976_v48  ;;  %v4593_v48 = vrot.slane %v3020_v56, 1 }
  0xfd   : > { %2014 = vrot.lane.b32.xlu1 %v4531_v52, %s3648_s16  ;;  %2012 = vrot.lane.b32.xlu0 %v4482_v35, %s3648_s16 }
  0xff   : > { %v1074_v15 = vpop.permute.xlu1 %1073  ;;  %v1072_v19 = vpop.permute.xlu0 %1071 }
 0x100   : > { %v1197_v10 = vsel %vm705_vm1, %v1179_v41, %v1074_v15  ;;  %v1195_v18 = vsel %vm705_vm1, %v1176_v53, %v1072_v19  ;;  %v3021_v15 = vcombine.low %v4572_v3, %v438_v39  ;;  %v3547_v19 = vld [vmem:[%s3796_s10 + $0x78] sm:$0xf] }
 0x101   : > { %1937 = vrot.lane.b32.xlu1 %v4506_v1, %s3648_s16  ;;  %1935 = vrot.lane.b32.xlu0 %v4508_v62, %s3648_s16  ;;  %v1123_v17 = vsel %vm680_vm0, %v3547_v19, %v978_v21 }
 0x102   : > { %v4591_v21 = vrot.slane %v3021_v15, 1  ;;  %v1920_v39 = vshll.u32 %v3021_v15, 16 }
 0x103   : > { %v1002_v40 = vpop.permute.xlu1 %1001  ;;  %v1000_v54 = vpop.permute.xlu0 %999 }
 0x104   : > { %v1141_v42 = vsel %vm705_vm1, %v1123_v17, %v1002_v40  ;;  %v1139_v12 = vsel %vm705_vm1, %v1120_v22, %v1000_v54 }
 0x105   : > { %2033 = vrot.lane.b32.xlu1 %v4548_v55, %s3647_s29  ;;  %2031 = vrot.lane.b32.xlu0 %v3026_v29, %s3647_s29 }
 0x107   : > { %v1100_v4 = vpop.permute.xlu1 %1099  ;;  %v1098_v58 = vpop.permute.xlu0 %1097 }
 0x108   : > { %v1213_v57 = vsel %vm722_vm2, %v1197_v10, %v1100_v4  ;;  %v1211_v6 = vsel %vm722_vm2, %v1195_v18, %v1098_v58  ;;  %v440_v4 = vld [vmem:[%s3796_s10 + $0xdc] sm:$0x1]  ;;  %v4597_v58 = vld [vmem:[%s3796_s10 + $0xd8] sm:$0xf] }
 0x109   : > { %v2954_v51 = vcombine.low %v1211_v6, %v1213_v57  ;;  %1961 = vrot.lane.b32.xlu1 %v4482_v35, %s3647_s29  ;;  %1959 = vrot.lane.b32.xlu0 %v4430_v8, %s3647_s29  ;;  %v4610_v56 = vcombine.low %v4597_v58, %v4597_v58  ;;  %v3028_v6 = vcombine.low %v4572_v3, %v4572_v3 }
 0x10b   : > { %v629_v50 = vpop.permute.xlu1 %628  ;;  %1483 = vmatprep.mubr.bf16.mxu0 %v2954_v51  ;;  %v627_v26 = vpop.permute.xlu0 %626 }
 0x10d   : > { %2059 = vrot.lane.b32.xlu1 %v4567_v63, %s3649_s15  ;;  %2057 = vrot.lane.b32.xlu0 %v4569_v24, %s3649_s15 }
 0x10f   : > { %v1028_v43 = vpop.permute.xlu1 %1027  ;;  %v1026_v41 = vpop.permute.xlu0 %1025 }
 0x110   : > { %v1157_v53 = vsel %vm722_vm2, %v1141_v42, %v1028_v43  ;;  %v1155_v10 = vsel %vm722_vm2, %v1139_v12, %v1026_v41  ;;  %v1918_v42 = vshrl.u32 %v3021_v15, 16  ;;  %v1922_v12 = vrot.slane %v1920_v39, 1 }
 0x111   : > { %v2953_v18 = vcombine.low %v1155_v10, %v1157_v53  ;;  %1987 = vrot.lane.b32.xlu1 %v3026_v29, %s3649_s15  ;;  %1985 = vrot.lane.b32.xlu0 %v4474_v49, %s3649_s15  ;;  %v3022_v29 = vcombine.low %v4597_v58, %v440_v4  ;;  %v756_v43 = vsel %vm680_vm0, %v4243_v20, %v629_v50 }
 0x112   : > { %v753_v41 = vsel %vm680_vm0, %v4147_v61, %v627_v26  ;;  %v4631_v61 = vor.u32 %v1922_v12, %v1918_v42 }
 0x113   : > { %v552_v40 = vpop.permute.xlu1 %551  ;;  %1484 = vmatmul.mubr.bf16.gmra.mrb[8].mxu0 %v2953_v18  ;;  %v550_v54 = vpop.permute.xlu0 %549  ;;  %v1927_v51 = vshll.u32 %v3022_v29, 16  ;;  %v1925_v25 = vshrl.u32 %v3022_v29, 16 }
 0x114   : > { %v698_v50 = vsel %vm680_vm0, %v4124_v14, %v552_v40  ;;  %v695_v26 = vsel %vm680_vm0, %v4094_v2, %v550_v54 }
 0x115   : > { %2018 = vrot.lane.b32.xlu1 %v4591_v21, %s3648_s16  ;;  %2016 = vrot.lane.b32.xlu0 %v4593_v48, %s3648_s16  ;;  %v1929_v22 = vrot.slane %v1927_v51, 1 }
 0x117   : > { %v648_v57 = vpop.permute.xlu1 %647  ;;  %v646_v49 = vpop.permute.xlu0 %645  ;;  %v4629_v20 = vor.u32 %v1929_v22, %v1925_v25 }
 0x118   : > { %v774_v53 = vsel %vm705_vm1, %v756_v43, %v648_v57  ;;  %v772_v10 = vsel %vm705_vm1, %v753_v41, %v646_v49  ;;  %v441_v57 = vld [vmem:[%s3796_s10 + $0xe0] sm:$0xf]  ;;  %v442_v49 = vld [vmem:[%s3796_s10 + $0xe4] sm:$0x1] }
 0x119   : > { %1941 = vrot.lane.b32.xlu1 %v4567_v63, %s3648_s16  ;;  %1939 = vrot.lane.b32.xlu0 %v4569_v24, %s3648_s16  ;;  %v4647_v2 = vcombine.low %v441_v57, %v442_v49 }
 0x11b   : > { %v576_v19 = vpop.permute.xlu1 %575  ;;  %v574_v17 = vpop.permute.xlu0 %573  ;;  %v2007_v54 = vrot.slane %v4647_v2, 1 }
 0x11c   : > { %v715_v39 = vsel %vm705_vm1, %v695_v26, %v574_v17  ;;  %v444_v17 = vld [vmem:[%s3796_s10 + $0xec] sm:$0x1] }
 0x11d   : > { %2037 = vrot.lane.b32.xlu1 %v4610_v56, %s3647_s29  ;;  %2035 = vrot.lane.b32.xlu0 %v3028_v6, %s3647_s29 }
 0x11f   : > { %v674_v18 = vpop.permute.xlu1 %673  ;;  %v672_v4 = vpop.permute.xlu0 %671 }
 0x120   : > { %v790_v5 = vsel %vm722_vm2, %v774_v53, %v674_v18  ;;  %v788_v51 = vsel %vm722_vm2, %v772_v10, %v672_v4  ;;  %v443_v10 = vld [vmem:[%s3796_s10 + $0xe8] sm:$0xf] }
 0x121   : > { %v2988_v15 = vcombine.low %v788_v51, %v790_v5  ;;  %1965 = vrot.lane.b32.xlu1 %v4593_v48, %s3647_s29  ;;  %1963 = vrot.lane.b32.xlu0 %v4531_v52, %s3647_s29  ;;  %v717_v5 = vsel %vm705_vm1, %v698_v50, %v576_v19  ;;  %v4653_v19 = vrot.slane %v3022_v29, 1  ;;  %v4662_v18 = vcombine.low %v443_v10, %v444_v17 }
 0x122   : > { %v3030_v29 = vcombine.low %v441_v57, %v441_v57 }
 0x123   : > { %v602_v43 = vpop.permute.xlu1 %601  ;;  %1753 = vmatprep.mubr.bf16.mxu1 %v2988_v15  ;;  %v600_v41 = vpop.permute.xlu0 %599  ;;  %v2049_v51 = vshll.u32 %v4662_v18, 16  ;;  %v2003_v15 = vshll.u32 %v4647_v2, 16  ;;  %v2047_v49 = vshrl.u32 %v4662_v18, 16 }
 0x124   : > { %v734_v25 = vsel %vm722_vm2, %v717_v5, %v602_v43  ;;  %v732_v22 = vsel %vm722_vm2, %v715_v39, %v600_v41  ;;  %v2001_v39 = vshrl.u32 %v4647_v2, 16 }
 0x125   : > { %v2987_v42 = vcombine.low %v732_v22, %v734_v25  ;;  %2063 = vrot.lane.b32.xlu1 %v4629_v20, %s3649_s15  ;;  %2061 = vrot.lane.b32.xlu0 %v4631_v61, %s3649_s15  ;;  %v2051_v5 = vrot.slane %v2049_v51, 1  ;;  %v2005_v43 = vrot.slane %v2003_v15, 1  ;;  %v3550_v15 = vld [vmem:[%s3796_s10 + $0x80] sm:$0xf] }
 0x127   : > { %v1059_v14 = vpop.permute.xlu1 %1058  ;;  %1754 = vmatmul.mubr.bf16.gmra.mrb[16].mxu1 %v2987_v42  ;;  %v1057_v40 = vpop.permute.xlu0 %1056 }
 0x128   : > { %v1185_v41 = vsel %vm680_vm0, %v4289_v9, %v1059_v14  ;;  %v1182_v57 = vsel %vm680_vm0, %v4187_v7, %v1057_v40  ;;  %v2052_v7 = vor.u32 %v2051_v5, %v2047_v49  ;;  %v4686_v9 = vor.u32 %v2005_v43, %v2001_v39 }
 0x129   : > { %1991 = vrot.lane.b32.xlu1 %v3028_v6, %s3649_s15  ;;  %1989 = vrot.lane.b32.xlu0 %v4548_v55, %s3649_s15  ;;  %v3032_v55 = vcombine.low %v443_v10, %v443_v10 }
 0x12b   : > { %v982_v12 = vpop.permute.xlu1 %981  ;;  %v980_v53 = vpop.permute.xlu0 %979 }
 0x12d   : > { %2022 = vrot.lane.b32.xlu1 %v2007_v54, %s3648_s16  ;;  %2020 = vrot.lane.b32.xlu0 %v4653_v19, %s3648_s16 }
 0x12f   : > { %v1078_v6 = vpop.permute.xlu1 %1077  ;;  %v1076_v4 = vpop.permute.xlu0 %1075 }
 0x130   : > { %v1201_v25 = vsel %vm705_vm1, %v1185_v41, %v1078_v6  ;;  %v1199_v22 = vsel %vm705_vm1, %v1182_v57, %v1076_v4  ;;  %v3549_v6 = vld [vmem:[%s3796_s10 + $0x88] sm:$0xf]  ;;  %v1126_v41 = vsel %vm680_vm0, %v3550_v15, %v980_v53  ;;  %s2871_s10 = sshll.u32 %s373_s11, 3 }
 0x131   : > { %1945 = vrot.lane.b32.xlu1 %v4629_v20, %s3648_s16  ;;  %1943 = vrot.lane.b32.xlu0 %v4631_v61, %s3648_s16  ;;  %v1129_v4 = vsel %vm680_vm0, %v3549_v6, %v982_v12  ;;  %s4882_s21 = scalar_lea.vmem %s4979_s7, %s2871_s10  ;;  %s4920_s16 = scalar_lea.sflag [#allocation3], %s355_s22 }
 0x133   : > { %v1006_v50 = vpop.permute.xlu1 %1005  ;;  %v1004_v26 = vpop.permute.xlu0 %1003 }
 0x134   : > { %v1145_v57 = vsel %vm705_vm1, %v1129_v4, %v1006_v50  ;;  %v1143_v49 = vsel %vm705_vm1, %v1126_v41, %v1004_v26 }
 0x135   : > { %2041 = vrot.lane.b32.xlu1 %v3032_v55, %s3647_s29  ;;  %2039 = vrot.lane.b32.xlu0 %v3030_v29, %s3647_s29 }
 0x137   : > { %v1104_v42 = vpop.permute.xlu1 %1103  ;;  %v1102_v17 = vpop.permute.xlu0 %1101 }
 0x138   : > { %v1217_v10 = vsel %vm722_vm2, %v1201_v25, %v1104_v42  ;;  %v1215_v55 = vsel %vm722_vm2, %v1199_v22, %v1102_v17 }
 0x139   : > { %v2957_v51 = vcombine.low %v1215_v55, %v1217_v10  ;;  %1969 = vrot.lane.b32.xlu1 %v4653_v19, %s3647_s29  ;;  %1967 = vrot.lane.b32.xlu0 %v4591_v21, %s3647_s29  ;;  %s4911_s29 = scalar_lea.hbm %s4980_s8, %s3117_s30 }
 0x13b   : > { %v633_v14 = vpop.permute.xlu1 %632  ;;  %1491 = vmatprep.mubr.bf16.mxu0 %v2957_v51  ;;  %v631_v40 = vpop.permute.xlu0 %630 }
 0x13c   : > { %v762_v26 = vsel %vm680_vm0, %v4378_v37, %v633_v14  ;;  %v759_v55 = vsel %vm680_vm0, %v4241_v16, %v631_v40 }
 0x13d   : > { %2067 = vrot.lane.b32.xlu1 %v2052_v7, %s3649_s15  ;;  %2065 = vrot.lane.b32.xlu0 %v4686_v9, %s3649_s15 }
 0x13f   : > { %v1032_v5 = vpop.permute.xlu1 %1031  ;;  %v1030_v39 = vpop.permute.xlu0 %1029 }
 0x140   : > { %v1161_v43 = vsel %vm722_vm2, %v1145_v57, %v1032_v5  ;;  %v1159_v25 = vsel %vm722_vm2, %v1143_v49, %v1030_v39  ;;  %v2983_v39 = vcombine.low %v3893_v59, %v4116_v46  ;;  %v679_v46 = vrot.slane %v4323_v31, 1 }
 0x141   : > { %v2956_v22 = vcombine.low %v1159_v25, %v1161_v43  ;;  %1995 = vrot.lane.b32.xlu1 %v3030_v29, %s3649_s15  ;;  %1993 = vrot.lane.b32.xlu0 %v4610_v56, %s3649_s15  ;;  %s3551_s15 = scalar_lea.vmem %s4913_s9, 1024 }
 0x142   : > { %p3552_p0 = scmp.ne.s32.totalorder %s4913_s9, %s3551_s15 }
 0x143   : > { %v556_v12 = vpop.permute.xlu1 %555  ;;  %1492 = vmatmul.mubr.bf16.gmra.mrb[12].mxu0 %v2956_v22  ;;  %v554_v42 = vpop.permute.xlu0 %553 }
 0x144   : > { %v704_v41 = vsel %vm680_vm0, %v4206_v34, %v556_v12  ;;  %v701_v37 = vsel %vm680_vm0, %v4180_v23, %v554_v42  ;;  %v2986_v23 = vcombine.low %v4113_v44, %v4198_v27  ;;  %v2989_v42 = vcombine.low %v4196_v28, %v4310_v45  ;;  %p3553_p1 = pnand %p3552_p0, %p3749_p3 }
 0x145   : > { %v2992_v28 = vcombine.low %v617_v38, %v679_v46  ;;  %v4994_v38 = vcombine.low %v4430_v8, %v4482_v35 }
 0x146   : > { %p3554_p2 = pneg %p3553_p1 }
 0x147   : > { %v652_v53 = vpop.permute.xlu1 %651  ;;  %v650_v17 = vpop.permute.xlu0 %649 }
 0x148   : > { %v778_v51 = vsel %vm705_vm1, %v762_v26, %v652_v53  ;;  %v776_v29 = vsel %vm705_vm1, %v759_v55, %v650_v17  ;;  %v3539_v53 = vld [vmem:[%s4973_s1 + $0x1a8] sm:$0xff]  }
 0x14b   : > { %v580_v50 = vpop.permute.xlu1 %579  ;;  %v578_v10 = vpop.permute.xlu0 %577 }
 0x14c   : > { %v721_v14 = vsel %vm705_vm1, %v704_v41, %v580_v50  ;;  %v719_v16 = vsel %vm705_vm1, %v701_v37, %v578_v10 }
 0x14f   : > { %v678_v7 = vpop.permute.xlu1 %677  ;;  %v676_v6 = vpop.permute.xlu0 %675 }
 0x150   : > { %v794_v56 = vsel %vm722_vm2, %v778_v51, %v678_v7  ;;  %v792_v4 = vsel %vm722_vm2, %v776_v29, %v676_v6  ;;  %v3075_v29 = vcombine.low %v4531_v52, %v4593_v48  ;;  %v2069_v52 = vrot.slane %v4662_v18, 1 }
 0x151   : > { %v2991_v15 = vcombine.low %v792_v4, %v794_v56 }
 0x153   : > { %v606_v40 = vpop.permute.xlu1 %605  ;;  %1761 = vmatprep.mubr.bf16.mxu1 %v2991_v15  ;;  %v604_v57 = vpop.permute.xlu0 %603 }
 0x154   : > { %v738_v49 = vsel %vm722_vm2, %v721_v14, %v606_v40  ;;  %v736_v5 = vsel %vm722_vm2, %v719_v16, %v604_v57  ;;  %v3081_v14 = vcombine.low %v2007_v54, %v2069_v52 }
 0x155   : > { %v2990_v43 = vcombine.low %v736_v5, %v738_v49 }
 0x157   : > { %v2011_v25 = vpop.permute.xlu1 %2010  ;;  %1762 = vmatmul.mubr.bf16.gmra.mrb[20].mxu1 %v2990_v43  ;;  %v2009_v34 = vpop.permute.xlu0 %2008 }
 0x158   : > { %3281 = vmatprep.mubr.msk.bf16.mxu1 %vm680_vm0, %v2983_v39  ;;  %v2131_v45 = vsel %vm680_vm0, %v4508_v62, %v2011_v25  ;;  %v2128_v50 = vsel %vm680_vm0, %v4457_v11, %v2009_v34 }
 0x15b   : > { %v1934_v22 = vpop.permute.xlu1 %1933  ;;  %v1932_v12 = vpop.permute.xlu0 %1931 }
 0x15c   : > { %v2075_v11 = vsel %vm680_vm0, %v4351_v60, %v1934_v22  ;;  %v2072_v51 = vsel %vm680_vm0, %v4368_v30, %v1932_v12  ;;  %v3078_v60 = vcombine.low %v4591_v21, %v4653_v19 }
 0x15f   : > { %v2030_v17 = vpop.permute.xlu1 %2029  ;;  %3282 = vmatmul.mubr.msk.bf16.vlgmr.msra.gmra.mrb[0].mxu1 %vm680_vm0, %v2986_v23  ;;  %v2028_v59 = vpop.permute.xlu0 %2027 }
 0x160   : > { %3285 = vmatprep.mubr.msk.bf16.mxu1 %vm680_vm0, %v2989_v42  ;;  %3290 = vmatpush3.bf16.msra.mxu1 %v4463_v13  ;;  %v2153_v10 = vsel %vm705_vm1, %v2131_v45, %v2030_v17  ;;  %v2151_v31 = vsel %vm705_vm1, %v2128_v50, %v2028_v59 }
 0x161   : > { %3291 = vmatprep.subr.bf16.mxu1 %v3539_v53 }
 0x163   : > { %v1958_v44 = vpop.permute.xlu1 %1957  ;;  %v1956_v27 = vpop.permute.xlu0 %1955 }
 0x164   : > { %3292 = vmatpush3.bf16.msra.mxu1 %v3539_v53  ;;  %v2097_v7 = vsel %vm705_vm1, %v2075_v11, %v1958_v44  ;;  %v2095_v6 = vsel %vm705_vm1, %v2072_v51, %v1956_v27 }
 0x167   : > { %v2056_v26 = vpop.permute.xlu1 %2055  ;;  %3286 = vmatmul.mubr.msk.bf16.gmra.mrb[4].mxu1 %vm680_vm0, %v2992_v28  ;;  %v2054_v13 = vpop.permute.xlu0 %2053 }
 0x168   : > { %v2169_v55 = vsel %vm722_vm2, %v2153_v10, %v2056_v26  ;;  %v2167_v0 = vsel %vm722_vm2, %v2151_v31, %v2054_v13  ;;  %3293 = vmatprep.mubr.msk.bf16.mxu1 %vm680_vm0, %v4994_v38 }
 0x169   : > { %v3071_v62 = vcombine.low %v2167_v0, %v2169_v55 }
 0x16b   : > { %v1984_v56 = vpop.permute.xlu1 %1983  ;;  %2431 = vmatprep.mubr.bf16.mxu0 %v3071_v62  ;;  %v1982_v4 = vpop.permute.xlu0 %1981 }
 0x16c   : > { %v2113_v8 = vsel %vm722_vm2, %v2097_v7, %v1984_v56  ;;  %v2111_v35 = vsel %vm722_vm2, %v2095_v6, %v1982_v4 }
 0x16d   : > { %v3070_v15 = vcombine.low %v2111_v35, %v2113_v8 }
 0x16f   : > { %v2015_v41 = vpop.permute.xlu1 %2014  ;;  %2432 = vmatmul.mubr.bf16.vlgmr.msra.gmra.mrb[16].mxu0 %v3070_v15  ;;  %3294 = vmatmul.mubr.msk.bf16.vlgmr.msra.gmra.mrb[0].mxu1 %vm680_vm0, %v3075_v29  ;;  %v2013_v30 = vpop.permute.xlu0 %2012 }
 0x170   : > { %3297 = vmatprep.mubr.msk.bf16.mxu1 %vm680_vm0, %v3078_v60  ;;  %v2137_v57 = vsel %vm680_vm0, %v4569_v24, %v2015_v41  ;;  %v2134_v49 = vsel %vm680_vm0, %v4506_v1, %v2013_v30 }
 0x173   : > { %v1938_v48 = vpop.permute.xlu1 %1937  ;;  %v1936_v37 = vpop.permute.xlu0 %1935 }
 0x174   : > { %v2081_v34 = vsel %vm680_vm0, %v4449_v33, %v1938_v48  ;;  %v2078_v24 = vsel %vm680_vm0, %v4381_v32, %v1936_v37 }
 0x177   : > { %v2034_v16 = vpop.permute.xlu1 %2033  ;;  %3298 = vmatmul.mubr.msk.bf16.gmra.mrb[4].mxu1 %vm680_vm0, %v3081_v14  ;;  %v2032_v40 = vpop.permute.xlu0 %2031 }
 0x178   : > { %v2157_v18 = vsel %vm705_vm1, %v2137_v57, %v2034_v16  ;;  %v2155_v5 = vsel %vm705_vm1, %v2134_v49, %v2032_v40 }
 0x17b   : > { %v1962_v21 = vpop.permute.xlu1 %1961  ;;  %v1960_v19 = vpop.permute.xlu0 %1959 }
 0x17c   : > { %v2101_v23 = vsel %vm705_vm1, %v2081_v34, %v1962_v21  ;;  %v2099_v1 = vsel %vm705_vm1, %v2078_v24, %v1960_v19 }
 0x17f   : > { %v2060_v39 = vpop.permute.xlu1 %2059  ;;  %v2058_v43 = vpop.permute.xlu0 %2057 }
 0x180   : > { %v2173_v2 = vsel %vm722_vm2, %v2157_v18, %v2060_v39  ;;  %v2171_v54 = vsel %vm722_vm2, %v2155_v5, %v2058_v43 }
 0x181   : > { %v3074_v25 = vcombine.low %v2171_v54, %v2173_v2 }
 0x183   : > { %v1988_v22 = vpop.permute.xlu1 %1987  ;;  %2439 = vmatprep.mubr.bf16.mxu0 %v3074_v25  ;;  %v1986_v12 = vpop.permute.xlu0 %1985 }
 0x184   : > { %v2117_v42 = vsel %vm722_vm2, %v2101_v23, %v1988_v22  ;;  %v2115_v53 = vsel %vm722_vm2, %v2099_v1, %v1986_v12 }
 0x185   : > { %v3073_v17 = vcombine.low %v2115_v53, %v2117_v42 }
 0x186   : > { %v3137_v59 = vpop.f32.mrb[0].mxu0 }
 0x187   : > { %v3138_v46 = vpop.f32.mrb[1].mxu0  ;;  %v2019_v44 = vpop.permute.xlu1 %2018  ;;  %2440 = vmatmul.mubr.bf16.gmra.mrb[20].mxu0 %v3073_v17 }
 0x188   : > { %v3139_v33 = vadd.f32 %v3138_v46, %v3137_v59  ;;  %v2017_v27 = vpop.permute.xlu0 %2016  ;;  %v3140_v28 = vpop.f32.mrb[2].mxu0  ;;  %v2143_v0 = vsel %vm680_vm0, %v4631_v61, %v2019_v44 }
 0x189   : > { %v3141_v32 = vpop.f32.mrb[3].mxu0  ;;  %v2140_v38 = vsel %vm680_vm0, %v4567_v63, %v2017_v27 }
 0x18a   : > { %v3142_v45 = vadd.f32 %v3141_v32, %v3140_v28 }
 0x18b   : > { %v1942_v50 = vpop.permute.xlu1 %1941 }
 0x18c   : > { %v1940_v10 = vpop.permute.xlu0 %1939  ;;  %v2087_v56 = vsel %vm680_vm0, %v4535_v47, %v1942_v50 }
 0x18d   : > { %v2084_v61 = vsel %vm680_vm0, %v4515_v36, %v1940_v10 }
 0x18f   : > { %v2038_v31 = vpop.permute.xlu1 %2037 }
 0x190   : > { %v2036_v26 = vpop.permute.xlu0 %2035  ;;  %v2161_v62 = vsel %vm705_vm1, %v2143_v0, %v2038_v31 }
 0x191   : > { %v2159_v51 = vsel %vm705_vm1, %v2140_v38, %v2036_v26 }
 0x193   : > { %v1966_v13 = vpop.permute.xlu1 %1965 }
 0x194   : > { %v1964_v55 = vpop.permute.xlu0 %1963  ;;  %v2105_v63 = vsel %vm705_vm1, %v2087_v56, %v1966_v13 }
 0x195   : > { %v2103_v15 = vsel %vm705_vm1, %v2084_v61, %v1964_v55 }
 0x197   : > { %v2064_v11 = vpop.permute.xlu1 %2063 }
 0x198   : > { %v2177_v29 = vsel %vm722_vm2, %v2161_v62, %v2064_v11  ;;  %v2062_v7 = vpop.permute.xlu0 %2061  ;;  %v3541_v62 = vld [vmem:[%s4976_s4] sm:$0xff]  }
 0x199   : > { %v2175_v6 = vsel %vm722_vm2, %v2159_v51, %v2062_v7  ;;  %3301 = vmatprep.subr.bf16.mxu0 %v3541_v62 }
 0x19a   : > { %v3077_v4 = vcombine.low %v2175_v6, %v2177_v29  ;;  %v3183_v8 = vpop.f32.mrb[8].mxu1  ;;  %3302 = vmatpush3.bf16.msra.mxu0 %v3541_v62  ;;  %v3542_v29 = vld [vmem:[%s4976_s4 + $0x8] sm:$0xff]  }
 0x19b   : > { %v1992_v35 = vpop.permute.xlu1 %1991  ;;  %v3184_v60 = vpop.f32.mrb[9].mxu1  ;;  %3303 = vmatprep.subr.bf16.mxu0 %v3542_v29 }
 0x19c   : > { %v2121_v41 = vsel %vm722_vm2, %v2105_v63, %v1992_v35  ;;  %v3185_v30 = vadd.f32 %v3184_v60, %v3183_v8  ;;  %2447 = vmatprep.mubr.bf16.mxu0 %v3077_v4  ;;  %v1990_v52 = vpop.permute.xlu0 %1989  ;;  %v3186_v48 = vpop.f32.mrb[10].mxu1 }
 0x19d   : > { %v2119_v37 = vsel %vm722_vm2, %v2103_v15, %v1990_v52  ;;  %v3187_v47 = vpop.f32.mrb[11].mxu1 }
 0x19e   : > { %v4797_v14 = vadd.f32 %v3185_v30, %v3139_v33  ;;  %v3076_v16 = vcombine.low %v2119_v37, %v2121_v41  ;;  %v3188_v40 = vadd.f32 %v3187_v47, %v3186_v48  ;;  %3304 = vmatpush3.bf16.msra.mxu0 %v3542_v29 }
 0x19f   : > { %v2023_v36 = vpop.permute.xlu1 %2022 }
 0x1a0   : > { %v4799_v21 = vadd.f32 %v3188_v40, %v3142_v45  ;;  %2448 = vmatmul.mubr.bf16.gmra.mrb[24].mxu0 %v3076_v16  ;;  %v2021_v19 = vpop.permute.xlu0 %2020  ;;  %v2149_v2 = vsel %vm680_vm0, %v4686_v9, %v2023_v36 }
 0x1a1   : > { %v2146_v54 = vsel %vm680_vm0, %v4629_v20, %v2021_v19 }
 0x1a3   : > { %v1946_v57 = vpop.permute.xlu1 %1945 }
 0x1a4   : > { %v1944_v49 = vpop.permute.xlu0 %1943  ;;  %v2093_v12 = vsel %vm680_vm0, %v4597_v58, %v1946_v57 }
 0x1a5   : > { %v2090_v9 = vsel %vm680_vm0, %v4572_v3, %v1944_v49 }
 0x1a7   : > { %v2042_v18 = vpop.permute.xlu1 %2041 }
 0x1a8   : > { %v2040_v5 = vpop.permute.xlu0 %2039  ;;  %v2165_v25 = vsel %vm705_vm1, %v2149_v2, %v2042_v18 }
 0x1a9   : > { %v2163_v24 = vsel %vm705_vm1, %v2146_v54, %v2040_v5 }
 0x1ab   : > { %v1970_v39 = vpop.permute.xlu1 %1969 }
 0x1ac   : > { %v1968_v43 = vpop.permute.xlu0 %1967  ;;  %v2109_v53 = vsel %vm705_vm1, %v2093_v12, %v1970_v39 }
 0x1ad   : > { %v2107_v17 = vsel %vm705_vm1, %v2090_v9, %v1968_v43 }
 0x1af   : > { %v2068_v34 = vpop.permute.xlu1 %2067 }
 0x1b0   : > { %v2181_v23 = vsel %vm722_vm2, %v2165_v25, %v2068_v34  ;;  %v2066_v1 = vpop.permute.xlu0 %2065 }
 0x1b1   : > { %v2179_v22 = vsel %vm722_vm2, %v2163_v24, %v2066_v1 }
 0x1b2   : > { %v3080_v42 = vcombine.low %v2179_v22, %v2181_v23 }
 0x1b3   : > { %v1996_v20 = vpop.permute.xlu1 %1995 }
 0x1b4   : > { %v2125_v59 = vsel %vm722_vm2, %v2109_v53, %v1996_v20  ;;  %2455 = vmatprep.mubr.bf16.mxu0 %v3080_v42  ;;  %v1994_v46 = vpop.permute.xlu0 %1993  ;;  %v4839_v53 = vld [vmem:[%s4974_s2] ss:$0 sm:$0xff] }
 0x1b5   : > { %v2123_v44 = vsel %vm722_vm2, %v2107_v17, %v1994_v46 }
 0x1b6   : > { %v3079_v33 = vcombine.low %v2123_v44, %v2125_v59  ;;  %v3143_v27 = vpop.f32.mrb[4].mxu0  ;;  %v4845_v59 = vld [vmem:[%s4975_s3] ss:$0 sm:$0xff] }
 0x1b7   : > { %v3144_v28 = vpop.f32.mrb[5].mxu0 }
 0x1b8   : > { %v3145_v32 = vadd.f32 %v3144_v28, %v3143_v27  ;;  %2456 = vmatmul.mubr.bf16.gmra.mrb[28].mxu0 %v3079_v33  ;;  %v3146_v58 = vpop.f32.mrb[6].mxu0 }
 0x1b9   : > { %v3147_v45 = vpop.f32.mrb[7].mxu0 }
 0x1ba   : > { %v3148_v50 = vadd.f32 %v3147_v45, %v3146_v58 }
 0x1ca   : > { %v3189_v3 = vpop.f32.mrb[12].mxu1 }
 0x1cb   : > { %v3190_v10 = vpop.f32.mrb[13].mxu1 }
 0x1cc   : > { %v3191_v31 = vadd.f32 %v3190_v10, %v3189_v3  ;;  %v3192_v26 = vpop.f32.mrb[14].mxu1 }
 0x1cd   : > { %v3193_v13 = vpop.f32.mrb[15].mxu1 }
 0x1ce   : > { %v4817_v55 = vadd.f32 %v3191_v31, %v3145_v32  ;;  %v3194_v0 = vadd.f32 %v3193_v13, %v3192_v26 }
 0x1d0   : > { %v4819_v38 = vadd.f32 %v3194_v0, %v3148_v50 }
 0x1e6   : > { %v3149_v11 = vpop.f32.mrb[8].mxu0 }
 0x1e7   : > { %v3150_v51 = vpop.f32.mrb[9].mxu0 }
 0x1e8   : > { %v3151_v7 = vadd.f32 %v3150_v51, %v3149_v11  ;;  %v3152_v6 = vpop.f32.mrb[10].mxu0 }
 0x1e9   : > { %v3153_v56 = vpop.f32.mrb[11].mxu0 }
 0x1ea   : > { %v3154_v4 = vadd.f32 %v3153_v56, %v3152_v6 }
 0x1fa   : > { %v3195_v8 = vpop.f32.mrb[16].mxu1 }
 0x1fb   : > { %v3196_v61 = vpop.f32.mrb[17].mxu1 }
 0x1fc   : > { %v3197_v63 = vadd.f32 %v3196_v61, %v3195_v8  ;;  %v3198_v35 = vpop.f32.mrb[18].mxu1 }
 0x1fd   : > { %v3199_v60 = vpop.f32.mrb[19].mxu1 }
 0x1fe   : > { %v4827_v15 = vadd.f32 %v3197_v63, %v3151_v7  ;;  %v3200_v41 = vadd.f32 %v3199_v60, %v3198_v35 }
 0x200   : > { %v4829_v30 = vadd.f32 %v3200_v41, %v3154_v4 }
 0x216   : > { %v3155_v52 = vpop.f32.mrb[12].mxu0 }
 0x217   : > { %v3156_v48 = vpop.f32.mrb[13].mxu0 }
 0x218   : > { %v3157_v37 = vadd.f32 %v3156_v48, %v3155_v52  ;;  %v3158_v47 = vpop.f32.mrb[14].mxu0 }
 0x219   : > { %v3159_v16 = vpop.f32.mrb[15].mxu0 }
 0x21a   : > { %v3160_v40 = vadd.f32 %v3159_v16, %v3158_v47 }
 0x22a   : > { %v3201_v36 = vpop.f32.mrb[20].mxu1 }
 0x22b   : > { %v3202_v19 = vpop.f32.mrb[21].mxu1 }
 0x22c   : > { %v3203_v57 = vadd.f32 %v3202_v19, %v3201_v36  ;;  %v3204_v49 = vpop.f32.mrb[22].mxu1 }
 0x22d   : > { %v3205_v18 = vpop.f32.mrb[23].mxu1 }
 0x22e   : > { %v4831_v5 = vadd.f32 %v3203_v57, %v3157_v37  ;;  %v3206_v39 = vadd.f32 %v3205_v18, %v3204_v49 }
 0x230   : > { %v4833_v43 = vadd.f32 %v3206_v39, %v3160_v40 }
 0x242   : > { %v3229_v2 = vpop.f32.mrb[16].mxu0  ;;  %v3295_v54 = vpop.f32.mrb[0].mxu1 }
 0x243   : > { %v3230_v25 = vpop.f32.mrb[17].mxu0  ;;  %v2498_v34 = vpop.f32.mrb[1].mxu1 }
 0x244   : > { %v3231_v24 = vadd.f32 %v3230_v25, %v3229_v2  ;;  %v3232_v23 = vpop.f32.mrb[18].mxu0  ;;  %v3296_v1 = vpop.f32.mrb[2].mxu1 }
 0x245   : > { %v3233_v22 = vpop.f32.mrb[19].mxu0  ;;  %v2501_v12 = vpop.f32.mrb[3].mxu1 }
 0x246   : > { %v3317_v42 = vadd.f32 %v4797_v14, %v3231_v24  ;;  %v3234_v9 = vadd.f32 %v3233_v22, %v3232_v23 }
 0x248   : > { %v3318_v20 = vadd.f32 %v3317_v42, %v2498_v34  ;;  %v3323_v17 = vadd.f32 %v4799_v21, %v3234_v9 }
 0x24a   : > { %v2544_v46 = vmul.f32 %v3318_v20, %v4839_v53  ;;  %v3324_v44 = vadd.f32 %v3323_v17, %v2501_v12  ;;  %v3299_v33 = vpop.f32.mrb[4].mxu1 }
 0x24b   : > { %v2514_v27 = vpop.f32.mrb[5].mxu1 }
 0x24c   : > { %v2559_v14 = vadd.f32 %v4845_v59, %v2544_v46  ;;  %v2545_v28 = vmul.f32 %v3324_v44, %v4839_v53  ;;  %v3300_v32 = vpop.f32.mrb[6].mxu1 }
 0x24d   : > { %v2517_v58 = vpop.f32.mrb[7].mxu1 }
 0x24e   : > { %v2560_v45 = vadd.f32 %v4845_v59, %v2545_v28  ;;  %v2567_v50 = vmax.f32 %v2559_v14, 0.0  ;;  %v2704_v14 = vld [vmem:[%s4882_s21 + $0x10] sm:$0xff] }
 0x250   : > { %v2568_v21 = vmax.f32 %v2560_v45, 0.0  ;;  %v2702_v45 = vld [vmem:[%s4882_s21] sm:$0xff] }
 0x252   : > { %v2575_v3 = vpack.c.bf16 %v2568_v21, %v2567_v50 }
 0x254   : > { %3305 = vmatprep.mubr.msk.bf16.mxu0 %vm680_vm0, %v2575_v3 }
 0x25a   : > { %v3235_v10 = vpop.f32.mrb[20].mxu0 }
 0x25b   : > { %v3236_v31 = vpop.f32.mrb[21].mxu0 }
 0x25c   : > { %v3237_v26 = vadd.f32 %v3236_v31, %v3235_v10  ;;  %v3238_v13 = vpop.f32.mrb[22].mxu0  ;;  %v2705_v10 = vld [vmem:[%s4882_s21 + $0x18] sm:$0xff] }
 0x25d   : > { %v3239_v0 = vpop.f32.mrb[23].mxu0 }
 0x25e   : > { %v3314_v62 = vadd.f32 %v4817_v55, %v3237_v26  ;;  %v3240_v11 = vadd.f32 %v3239_v0, %v3238_v13  ;;  %v2703_v0 = vld [vmem:[%s4882_s21 + $0x8] sm:$0xff] }
 0x260   : > { %v3315_v51 = vadd.f32 %v3314_v62, %v3295_v54  ;;  %v3320_v29 = vadd.f32 %v4819_v38, %v3240_v11 }
 0x262   : > { %v2546_v7 = vmul.f32 %v3315_v51, %v4839_v53  ;;  %v3321_v6 = vadd.f32 %v3320_v29, %v3296_v1 }
 0x264   : > { %v2561_v56 = vadd.f32 %v4845_v59, %v2546_v7  ;;  %v2547_v4 = vmul.f32 %v3321_v6, %v4839_v53 }
 0x266   : > { %v2562_v8 = vadd.f32 %v4845_v59, %v2547_v4  ;;  %v2569_v61 = vmax.f32 %v2561_v56, 0.0 }
 0x268   : > { %v2570_v63 = vmax.f32 %v2562_v8, 0.0 }
 0x26a   : > { %v2576_v35 = vpack.c.bf16 %v2570_v63, %v2569_v61 }
 0x26c   : > { %3306 = vmatmul.mubr.msk.bf16.vlgmr.msra.gmra.mrb[32].mxu0 %vm680_vm0, %v2576_v35  ;;  %v2708_v35 = vld [vmem:[%s4882_s21 + $0x30] sm:$0xff] }
 0x273   : > { %v3241_v60 = vpop.f32.mrb[24].mxu0 }
 0x274   : > { %v3242_v55 = vpop.f32.mrb[25].mxu0 }
 0x275   : > { %v3243_v41 = vadd.f32 %v3242_v55, %v3241_v60  ;;  %v3244_v52 = vpop.f32.mrb[26].mxu0 }
 0x276   : > { %v3245_v48 = vpop.f32.mrb[27].mxu0 }
 0x277   : > { %v3329_v38 = vadd.f32 %v4827_v15, %v3243_v41  ;;  %v3246_v37 = vadd.f32 %v3245_v48, %v3244_v52  ;;  %v2706_v52 = vld [vmem:[%s4882_s21 + $0x20] sm:$0xff] }
 0x279   : > { %v3330_v47 = vadd.f32 %v3329_v38, %v2514_v27  ;;  %v3335_v16 = vadd.f32 %v4829_v30, %v3246_v37 }
 0x27b   : > { %v2548_v40 = vmul.f32 %v3330_v47, %v4839_v53  ;;  %v3336_v36 = vadd.f32 %v3335_v16, %v2517_v58  ;;  %v2709_v47 = vld [vmem:[%s4882_s21 + $0x38] sm:$0xff] }
 0x27d   : > { %v2563_v19 = vadd.f32 %v4845_v59, %v2548_v40  ;;  %v2549_v57 = vmul.f32 %v3336_v36, %v4839_v53 }
 0x27f   : > { %v2564_v49 = vadd.f32 %v4845_v59, %v2549_v57  ;;  %v2571_v18 = vmax.f32 %v2563_v19, 0.0  ;;  %v2707_v19 = vld [vmem:[%s4882_s21 + $0x28] sm:$0xff]  ;;  %s3555_s21 = sshll.u32 %s3650_s23, 4  ;;  %s3556_s21 = int_to_ptr.vmem [resolvable:$false] %s3555_s21 }
 0x280   : > { %s3557_s24 = scalar_lea.vmem %s3556_s21, 2048  ;;  %p3558_p4 = scmp.lt.s32.totalorder %s4913_s9, %s3556_s21 }
 0x281   : > { %v2572_v39 = vmax.f32 %v2564_v49, 0.0  ;;  %p3559_p5 = scmp.lt.s32.totalorder %s3557_s24, %s3551_s15 }
 0x283   : > { %v2577_v2 = vpack.c.bf16 %v2572_v39, %v2571_v18  ;;  %p3560_p6 = por %p3559_p5, %p3558_p4 }
 0x285   : > { %3309 = vmatprep.mubr.msk.bf16.mxu0 %vm680_vm0, %v2577_v2  ;;  %p3561_p7 = pnand %p3560_p6, %p3554_p2 }
 0x28b   : > { %v3247_v54 = vpop.f32.mrb[28].mxu0 }
 0x28c   : > { %v3248_v15 = vpop.f32.mrb[29].mxu0 }
 0x28d   : > { %v3249_v25 = vadd.f32 %v3248_v15, %v3247_v54  ;;  %v3250_v34 = vpop.f32.mrb[30].mxu0 }
 0x28e   : > { %v3251_v30 = vpop.f32.mrb[31].mxu0 }
 0x28f   : > { %v3326_v24 = vadd.f32 %v4831_v5, %v3249_v25  ;;  %v3252_v23 = vadd.f32 %v3251_v30, %v3250_v34  ;;  %v3112_v5 = vld [vmem:[%s4977_s5] ss:$0 sm:$0xff] }
 0x291   : > { %v3327_v1 = vadd.f32 %v3326_v24, %v3299_v33  ;;  %v3332_v22 = vadd.f32 %v4833_v43, %v3252_v23 }
 0x293   : > { %v2550_v12 = vmul.f32 %v3327_v1, %v4839_v53  ;;  %v3333_v42 = vadd.f32 %v3332_v22, %v3300_v32 }
 0x295   : > { %v2565_v9 = vadd.f32 %v4845_v59, %v2550_v12  ;;  %v2551_v20 = vmul.f32 %v3333_v42, %v4839_v53  ;;  %v3113_v53 = vld [vmem:[%s4978_s6] ss:$0 sm:$0xff] }
 0x297   : > { %v2566_v17 = vadd.f32 %v4845_v59, %v2551_v20  ;;  %v2573_v46 = vmax.f32 %v2565_v9, 0.0 }
 0x299   : > { %v2574_v44 = vmax.f32 %v2566_v17, 0.0 }
 0x29b   : > { %v2578_v27 = vpack.c.bf16 %v2574_v44, %v2573_v46 }
 0x29d   : > { %3310 = vmatmul.mubr.msk.bf16.gmra.mrb[36].mxu0 %vm680_vm0, %v2578_v27 }
 0x33f   : > { %v3307_v43 = vpop.f32.mrb[32].mxu0 }
 0x340   : > { %v2681_v59 = vmul.f32 %v3307_v43, %v3112_v5  ;;  %v2641_v33 = vpop.f32.mrb[33].mxu0 }
 0x341   : > { %v2679_v28 = vmul.f32 %v3112_v5, %v2641_v33  ;;  %v3308_v32 = vpop.f32.mrb[34].mxu0 }
 0x342   : > { %v2696_v58 = vadd.f32 %v3113_v53, %v2681_v59  ;;  %v2682_v50 = vmul.f32 %v3308_v32, %v3112_v5  ;;  %v2644_v21 = vpop.f32.mrb[35].mxu0 }
 0x343   : > { %v2694_v3 = vadd.f32 %v3113_v53, %v2679_v28  ;;  %v2680_v31 = vmul.f32 %v3112_v5, %v2644_v21 }
 0x344   : > { %v2712_v26 = vadd.f32 %v2704_v14, %v2696_v58  ;;  %v2697_v13 = vadd.f32 %v3113_v53, %v2682_v50 }
 0x345   : > { %v2710_v62 = vadd.f32 %v2702_v45, %v2694_v3  ;;  %v2695_v11 = vadd.f32 %v3113_v53, %v2680_v31 }
 0x346   : > { %v2720_v51 = vmax.f32 %v2712_v26, 0.0  ;;  %v2713_v29 = vadd.f32 %v2705_v10, %v2697_v13 }
 0x347   : > { %v2718_v7 = vmax.f32 %v2710_v62, 0.0  ;;  %v2711_v6 = vadd.f32 %v2703_v0, %v2695_v11 }
 0x348   : > { %2728 = vst [vmem:[%s4894_s26 + $0x10] sm:$0xff] %v2720_v51  ;;  %v2721_v56 = vmax.f32 %v2713_v29, 0.0 }
 0x349   : > { %2726 = vst [vmem:[%s4894_s26] sm:$0xff] %v2718_v7  ;;  %v2719_v4 = vmax.f32 %v2711_v6, 0.0 }
 0x34a   : > { %2729 = vst [vmem:[%s4894_s26 + $0x18] sm:$0xff] %v2721_v56 }
 0x34b   : > { %2727 = vst [vmem:[%s4894_s26 + $0x8] sm:$0xff] %v2719_v4 }
 0x370   : > { %v3311_v8 = vpop.f32.mrb[36].mxu0 }
 0x371   : > { %v2685_v61 = vmul.f32 %v3311_v8, %v3112_v5  ;;  %v2657_v63 = vpop.f32.mrb[37].mxu0 }
 0x372   : > { %v2683_v60 = vmul.f32 %v3112_v5, %v2657_v63  ;;  %v3312_v55 = vpop.f32.mrb[38].mxu0 }
 0x373   : > { %v2700_v41 = vadd.f32 %v3113_v53, %v2685_v61  ;;  %v2686_v48 = vmul.f32 %v3312_v55, %v3112_v5  ;;  %v2660_v38 = vpop.f32.mrb[39].mxu0 }
 0x374   : > { %v2698_v37 = vadd.f32 %v3113_v53, %v2683_v60  ;;  %v2684_v16 = vmul.f32 %v3112_v5, %v2660_v38 }
 0x375   : > { %v2716_v40 = vadd.f32 %v2708_v35, %v2700_v41  ;;  %v2701_v36 = vadd.f32 %v3113_v53, %v2686_v48 }
 0x376   : > { %v2714_v57 = vadd.f32 %v2706_v52, %v2698_v37  ;;  %v2699_v49 = vadd.f32 %v3113_v53, %v2684_v16 }
 0x377   : > { %v2724_v18 = vmax.f32 %v2716_v40, 0.0  ;;  %v2717_v39 = vadd.f32 %v2709_v47, %v2701_v36 }
 0x378   : > { %v2722_v2 = vmax.f32 %v2714_v57, 0.0  ;;  %v2715_v54 = vadd.f32 %v2707_v19, %v2699_v49 }
 0x379   : > { %2732 = vst [vmem:[%s4894_s26 + $0x30] sm:$0xff] %v2724_v18  ;;  %v2725_v15 = vmax.f32 %v2717_v39, 0.0 }
 0x37a   : > { %2730 = vst [vmem:[%s4894_s26 + $0x20] sm:$0xff] %v2722_v2  ;;  %v2723_v25 = vmax.f32 %v2715_v54, 0.0 }
 0x37b   : > { %2733 = vst [vmem:[%s4894_s26 + $0x38] sm:$0xff] %v2725_v15 }
 0x37c   : > { %2731 = vst [vmem:[%s4894_s26 + $0x28] sm:$0xff] %v2723_v25 }
 0x37d   : > { %3564 = shalt.err (!%p3561_p7)
}
 0x37e   : > { %s3565_s22 = scalar_lea.hbm %s4911_s29, 1024  ;;  %s3569_s26 = scalar_lea.hbm %s4980_s8, 8192 }
 0x37f   : > { %p3566_p9 = scmp.ne.s32.totalorder %s4911_s29, %s3565_s22  ;;  %p3570_p12 = scmp.lt.u32.totalorder %s4911_s29, %s4980_s8 }
 0x380   : > { %p3571_p13 = scmp.lt.u32.totalorder %s3569_s26, %s3565_s22  ;;  %p3573_p1 = scmp.lt.u32.totalorder %s3565_s22, %s4911_s29 }
 0x381   : > { %p3567_p10 = pnand %p3566_p9, %p3749_p3 }
 0x382   : > { %p3572_p0 = por %p3571_p13, %p3570_p12 }
 0x383   : > { %p3568_p11 = pneg %p3567_p10 }
 0x384   : > { %p3574_p2 = por %p3573_p1, %p3572_p0 }
 0x386   : > { %p3575_p4 = pnand %p3574_p2, %p3568_p11 }
 0x388   : > { %3578 = shalt.err (!%p3575_p4)
}
 0x389   : > { %s3651_s20 = smov 128   ;;  %s3652_s30 = smov 8  }
 0x38a   : > { %3354 = dma.vmem_to_hbm [thread:$0]  (%p3749_p3), %s4913_s9, 1024, %s4911_s29, %s4920_s16, %s3651_s20, %s3651_s20, %s3652_s30  }
 0x38b PF: > { %p3360_p5 = scmp.ge.s32.totalorder %s3645_s12, 2  ;;  %s2767_s11 = sand.u32 1, %s3617_s27  }
 0x38c   : > { %s2768_s10 = scalar_lea.sflag [#allocation3], %s2767_s11 }
 0x38d   : > { %p3357_p6 = pnand %p3360_p5, %p3758_p8 }
 0x38f   : > { %3612 = dma.done.wait (!%p3357_p6), %s2768_s10, 1024  }
 0x390   : > { %3614 = vsyncadd (!%p3357_p6), %s2768_s10, 4294966272  ;;  %s21_s12 = sadd.s32 1, %s3645_s12   ;;  %s4995_s15 = sld [smem:[#allocation5_spill]] }
 0x391   : > { %p18_p7 = scmp.ge.s32.totalorder %s21_s12, 10   ;;  %s4996_s29 = sld [smem:[#allocation10_spill]] }
 0x392   : > { %s4997_s30 = sld [smem:[#allocation6_spill]]  ;;  %s4998_s9 = sld [smem:[#allocation7_spill]] }
 0x393   : > { %s4999_s10 = sld [smem:[#allocation8_spill]]  ;;  %s5000_s11 = sld [smem:[#allocation9_spill]] }
 0x394   : > { %s5001_s27 = smov %s3621_s28  ;;  %20 = sbr.rel (!%p18_p7) target bundleno = 5 (0x5), region = 93 }
 0x396   : > { %s5002_s28 = smov %s4995_s15 }
 0x39b   :  { %2773 = vsyncpa [#allocation3], 1 }
 0x39c   :  { %2775 = vsyncpa [#allocation3 + $0x1], 1 }

</bundles_post_ra>
